<compile_context>
chip_gen: v7x
topology: tpu7x:2x2x1
jax: 0.10.0
libtpu: 0.0.40
codegen_flags: <defaults>
</compile_context>

<pallas_src>
import functools

import numpy as np
import jax
import jax.numpy as jnp
from jax.experimental import pallas as pl
from jax.experimental.pallas import tpu as pltpu

# Row layout of the packed host-precomputed mask operand.
_MASK_PAD = 0        # ConvTranspose un-padded (bias) region
_MASK_UP = 1         # rows 1..3 : ConvT taps (0,1), (1,0), (1,1) roll-wrap masks
_MASK_CONV = 4       # rows 4..12: 3x3 conv taps t = dy*3+dx boundary masks
_MASK_SAMPLE = 13    # rows 13.. : per-sample lane masks (segmented InstanceNorm)


# ----------------------------------------------------------------------------
# Fused kernel: one grid step processes NB samples laid along the lane axis.
# ----------------------------------------------------------------------------
def _unet_up_kernel(x1d_ref, x2_ref, upw_ref, upb_ref, masks_ref,
                    c1w_ref, c1b_ref, c2w_ref, c2b_ref, o_ref,
                    *, W2, M2, NB):
    f32, bf16 = jnp.float32, jnp.bfloat16
    L = NB * M2
    inv_m2 = 1.0 / M2

    masks = masks_ref[...]                    # (13+NB, L) host-precomputed
    x1f = x1d_ref[0].astype(f32)              # (Cin1, L) 2x-dilated x1 (tap 0,0)
    x2f = x2_ref[0].astype(f32)               # (C2,   L) skip connection

    # ---- ConvTranspose2d(k=2, s=2) + F.pad : 4 accumulating tap matmuls -----
    # Taps (dy,dx) != (0,0) of the dilated input are lane rolls of tap (0,0);
    # the tiny masks only kill roll wrap-around at the r<dy / c<dx edges.
    up = upb_ref[...] * masks[_MASK_PAD:_MASK_PAD + 1]    # bias inside pad area
    for t, (dy, dx) in enumerate(((0, 0), (0, 1), (1, 0), (1, 1))):
        off = dy * W2 + dx
        if off == 0:
            xt = x1f
        else:
            xt = (pltpu.roll(x1f, shift=off, axis=1)
                  * masks[_MASK_UP + (t - 1):_MASK_UP + t])
        up = up + jnp.dot(upw_ref[t], xt.astype(bf16),
                          preferred_element_type=f32)

    # ---- torch.cat([x2, up], dim=1)  (channel == sublane axis) --------------
    cat = jnp.concatenate([x2f, up], axis=0)  # (Ccat, L)

    def conv3x3(x, w_ref, b_ref):
        # 9 accumulating tap matmuls -- no (9*C, L) patch matrix materialized.
        y = jnp.zeros((w_ref.shape[1], L), f32) + b_ref[...]
        for t in range(9):
            dy, dx = divmod(t, 3)
            off = (dy - 1) * W2 + (dx - 1)
            if off == 0:
                xt = x
            else:
                xt = (pltpu.roll(x, shift=(-off) % L, axis=1)
                      * masks[_MASK_CONV + t:_MASK_CONV + t + 1])
            y = y + jnp.dot(w_ref[t], xt.astype(bf16),
                            preferred_element_type=f32)
        return y

    def inst_norm_lrelu(y):
        # InstanceNorm2d(eps=1e-5, affine=False): per-sample stats over the
        # lane (spatial) axis; NB samples are concatenated along lanes.
        if NB == 1:
            mean = jnp.mean(y, axis=1, keepdims=True)
            d = y - mean
            inv = jax.lax.rsqrt(jnp.mean(d * d, axis=1, keepdims=True) + 1e-5)
            y = d * inv
        else:
            mean_full = jnp.zeros_like(y)
            for n in range(NB):
                m = masks[_MASK_SAMPLE + n:_MASK_SAMPLE + n + 1]
                mean_full = mean_full + m * (
                    jnp.sum(y * m, axis=1, keepdims=True) * inv_m2)
            d = y - mean_full                 # two-pass: var cannot go negative
            dd = d * d
            inv_full = jnp.zeros_like(y)
            for n in range(NB):
                m = masks[_MASK_SAMPLE + n:_MASK_SAMPLE + n + 1]
                var = jnp.sum(dd * m, axis=1, keepdims=True) * inv_m2
                inv_full = inv_full + m * jax.lax.rsqrt(var + 1e-5)
            y = d * inv_full
        return jnp.maximum(y, 0.01 * y)        # LeakyReLU(0.01)

    h = inst_norm_lrelu(conv3x3(cat, c1w_ref, c1b_ref))
    o_ref[0] = inst_norm_lrelu(conv3x3(h, c2w_ref, c2b_ref)).astype(o_ref.dtype)


# ----------------------------------------------------------------------------
# Host wrapper (layout prep + dilation only; all compute in the Pallas kernel)
# ----------------------------------------------------------------------------
def _pick_samples_per_block(n_batch, m2):
    """Samples folded along lanes per grid step.  Single-TC v5e/v6e want one
    big step; v7x wants >=2 'parallel' steps, so for N >= 4 we make 2 chunks.
    Lane width is capped so per-step activations stay VMEM-friendly."""
    cap = max(1, 4096 // max(m2, 1))
    nb = n_batch if n_batch <= 2 else (n_batch + 1) // 2
    nb = max(1, min(nb, cap))
    while n_batch % nb:
        nb -= 1
    return nb


def _build_masks(H1, W1, H2, W2, py, px, NB):
    M2 = H2 * W2
    r = np.arange(M2) // W2
    c = np.arange(M2) % W2
    base = np.zeros((13, M2), np.float32)
    base[_MASK_PAD] = ((r >= py) & (r < py + 2 * H1) &
                       (c >= px) & (c < px + 2 * W1))
    for i, (dy, dx) in enumerate(((0, 1), (1, 0), (1, 1)), start=_MASK_UP):
        base[i] = (r >= dy) & (c >= dx)
    for t in range(9):
        dy, dx = divmod(t, 3)
        base[_MASK_CONV + t] = ((r + dy - 1 >= 0) & (r + dy - 1 < H2) &
                                (c + dx - 1 >= 0) & (c + dx - 1 < W2))
    base = np.tile(base, (1, NB))                          # (13, NB*M2)
    samp = np.zeros((NB, NB * M2), np.float32)
    for n in range(NB):
        samp[n, n * M2:(n + 1) * M2] = 1.0
    return jnp.asarray(np.concatenate([base, samp], axis=0))


def unet_up_forward(x1, x2, params, *, samples_per_block=None,
                    out_dtype=jnp.float32):
    """UNetUp.forward.  x1: (N, Cin, H1, W1) low-res, x2: (N, C2, H2, W2) skip."""
    N, Cin1, H1, W1 = x1.shape
    N2, C2, H2, W2 = x2.shape
    assert N2 == N
    Coup = params["up_w"].shape[1]                         # Cin1 // 2
    Cout = params["c2_w"].shape[0]
    Ccat = C2 + Coup
    assert params["c1_w"].shape[1] == Ccat
    M2 = H2 * W2
    dY, dX = H2 - 2 * H1, W2 - 2 * W1
    assert dY >= 0 and dX >= 0, "negative pad (crop) not supported"
    py, px = dY // 2, dX // 2

    NB = samples_per_block or _pick_samples_per_block(N, M2)
    assert N % NB == 0
    G = N // NB
    L = NB * M2

    # -- ConvT input, 2x-dilated on the host (tap (0,0) copy at H2 resolution).
    x1d = jnp.zeros((N, Cin1, H2, W2), jnp.float32)
    x1d = x1d.at[:, :, py:py + 2 * H1:2, px:px + 2 * W1:2].set(
        x1.astype(jnp.float32))

    # -- Lane-dense block layout: (G, C, NB*H2*W2), bf16 activations in HBM. --
    def to_blocks(a):
        C = a.shape[1]
        return (a.reshape(G, NB, C, -1).transpose(0, 2, 1, 3)
                 .reshape(G, C, L).astype(jnp.bfloat16))

    x1d_b = to_blocks(x1d)
    x2_b = to_blocks(x2.astype(jnp.float32))

    # -- Weights reordered for (Cout, K) x (K, L) tap matmuls. ----------------
    upw = (jnp.transpose(params["up_w"], (2, 3, 1, 0))
              .reshape(4, Coup, Cin1).astype(jnp.bfloat16))
    upb = params["up_b"].reshape(Coup, 1).astype(jnp.float32)
    c1w = (jnp.transpose(params["c1_w"], (2, 3, 0, 1))
              .reshape(9, Cout, Ccat).astype(jnp.bfloat16))
    c1b = params["c1_b"].reshape(Cout, 1).astype(jnp.float32)
    c2w = (jnp.transpose(params["c2_w"], (2, 3, 0, 1))
              .reshape(9, Cout, Cout).astype(jnp.bfloat16))
    c2b = params["c2_b"].reshape(Cout, 1).astype(jnp.float32)
    masks = _build_masks(H1, W1, H2, W2, py, px, NB)       # (13+NB, L)

    kern = functools.partial(_unet_up_kernel, W2=W2, M2=M2, NB=NB)

    flops = 2 * N * M2 * (4 * Coup * Cin1 + 9 * Cout * Ccat + 9 * Cout * Cout)
    bytes_accessed = int(
        2 * (x1d_b.size + x2_b.size + upw.size + c1w.size + c2w.size)
        + 4 * (upb.size + c1b.size + c2b.size + masks.size)
        + N * Cout * M2 * np.dtype(out_dtype).itemsize)
    transcendentals = 2 * N * Cout                         # rsqrt per conv/ch/sample

    def const_spec(shape):
        imap = (lambda n: (0, 0)) if len(shape) == 2 else (lambda n: (0, 0, 0))
        # Constant index_map across the grid -> single-buffer these operands.
        return pl.BlockSpec(shape, imap, pipeline_mode=pl.Buffered(1))

    out = pl.pallas_call(
        kern,
        out_shape=jax.ShapeDtypeStruct((G, Cout, L), out_dtype),
        grid=(G,),
        in_specs=[
            pl.BlockSpec((1, Cin1, L), lambda n: (n, 0, 0)),
            pl.BlockSpec((1, C2, L), lambda n: (n, 0, 0)),
            const_spec((4, Coup, Cin1)),
            const_spec((Coup, 1)),
            const_spec((13 + NB, L)),
            const_spec((9, Cout, Ccat)),
            const_spec((Cout, 1)),
            const_spec((9, Cout, Cout)),
            const_spec((Cout, 1)),
        ],
        out_specs=pl.BlockSpec((1, Cout, L), lambda n: (n, 0, 0)),
        compiler_params=pltpu.CompilerParams(
            dimension_semantics=("parallel",)),
        cost_estimate=pl.CostEstimate(flops=flops,
                                      transcendentals=transcendentals,
                                      bytes_accessed=bytes_accessed),
    )(x1d_b, x2_b, upw, upb, masks, c1w, c1b, c2w, c2b)

    return (out.reshape(G, Cout, NB, M2).transpose(0, 2, 1, 3)
               .reshape(N, Cout, H2, W2))


# ----------------------------------------------------------------------------
# Deterministic params + plain-JAX reference for the sanity check
# ----------------------------------------------------------------------------
def init_params(key, in_channels, out_channels):
    ks = jax.random.split(key, 6)

    def nrm(k, shape, scale=0.1):
        return scale * jax.random.normal(k, shape, jnp.float32)

    return {
        "up_w": nrm(ks[0], (in_channels, in_channels // 2, 2, 2)),
        "up_b": nrm(ks[1], (in_channels // 2,)),
        "c1_w": nrm(ks[2], (out_channels, in_channels, 3, 3)),
        "c1_b": nrm(ks[3], (out_channels,)),
        "c2_w": nrm(ks[4], (out_channels, out_channels, 3, 3)),
        "c2_b": nrm(ks[5], (out_channels,)),
    }


def _ref_forward(x1, x2, p):
    # ConvTranspose2d(k=2, s=2)
    up = jnp.einsum("nchw,cokl->nohkwl", x1, p["up_w"])
    N, Co, H, _, W, _ = up.shape
    up = up.reshape(N, Co, 2 * H, 2 * W) + p["up_b"][None, :, None, None]
    dY = x2.shape[2] - up.shape[2]
    dX = x2.shape[3] - up.shape[3]
    up = jnp.pad(up, ((0, 0), (0, 0), (dY // 2, dY - dY // 2),
                      (dX // 2, dX - dX // 2)))
    x = jnp.concatenate([x2, up], axis=1)

    def conv_in_lrelu(x, w, b):
        y = jax.lax.conv_general_dilated(
            x, w, window_strides=(1, 1), padding=((1, 1), (1, 1)),
            dimension_numbers=("NCHW", "OIHW", "NCHW"))
        y = y + b[None, :, None, None]
        mean = jnp.mean(y, axis=(2, 3), keepdims=True)
        var = jnp.mean((y - mean) ** 2, axis=(2, 3), keepdims=True)
        y = (y - mean) * jax.lax.rsqrt(var + 1e-5)
        return jnp.where(y >= 0, y, 0.01 * y)

    h = conv_in_lrelu(x, p["c1_w"], p["c1_b"])
    return conv_in_lrelu(h, p["c2_w"], p["c2_b"])


# ----------------------------------------------------------------------------
if __name__ == "__main__":
    key = jax.random.PRNGKey(0)
    k1, k2, kp = jax.random.split(key, 3)

    N, Cin, Cout = 2, 16, 8
    x1 = jax.random.normal(k1, (N, Cin, 8, 8), jnp.float32)          # low-res
    x2 = jax.random.normal(k2, (N, Cin // 2, 16, 16), jnp.float32)   # skip
    params = init_params(kp, Cin, Cout)

    fwd = jax.jit(functools.partial(unet_up_forward, params=params))
    out = jax.block_until_ready(fwd(x1, x2))
    assert out.shape == (N, Cout, 16, 16), out.shape

    # Sanity check vs plain-JAX reference (kernel feeds the MXU bf16 operands).
    ref = _ref_forward(x1, x2, params)
    err = float(jnp.max(jnp.abs(out - ref)))
    rel = err / (float(jnp.max(jnp.abs(ref))) + 1e-6)
    assert err < 0.2 and rel < 0.05, (err, rel)

    print("KERNEL_OK")
</pallas_src>

<mosaic_0001>
module attributes {stable_mosaic.version = 11 : i64} {
  func.func @_unet_up_kernel(%arg0: i32, %arg1: memref<1x16x512xbf16, #tpu.memory_space<vmem>>, %arg2: memref<1x8x512xbf16, #tpu.memory_space<vmem>>, %arg3: memref<4x8x16xbf16, #tpu.memory_space<vmem>>, %arg4: memref<8x1xf32, #tpu.memory_space<vmem>>, %arg5: memref<15x512xf32, #tpu.memory_space<vmem>>, %arg6: memref<9x8x16xbf16, #tpu.memory_space<vmem>>, %arg7: memref<8x1xf32, #tpu.memory_space<vmem>>, %arg8: memref<9x8x8xbf16, #tpu.memory_space<vmem>>, %arg9: memref<8x1xf32, #tpu.memory_space<vmem>>, %arg10: memref<1x8x512xf32, #tpu.memory_space<vmem>>) attributes {dimension_semantics = [#tpu.dimension_semantics<parallel>], iteration_bounds = array<i64: 1>, scalar_prefetch = 0 : i64, scratch_operands = 0 : i64, tpu.core_type = #tpu.core_type<tc>, window_params = [{transform_indices = @transform_0, window_bounds = array<i64: 1, 16, 512>}, {transform_indices = @transform_1, window_bounds = array<i64: 1, 8, 512>}, {pipeline_mode = #tpu.pipeline_mode<synchronous>, transform_indices = @transform_2, window_bounds = array<i64: 4, 8, 16>}, {pipeline_mode = #tpu.pipeline_mode<synchronous>, transform_indices = @transform_3, window_bounds = array<i64: 8, 1>}, {pipeline_mode = #tpu.pipeline_mode<synchronous>, transform_indices = @transform_4, window_bounds = array<i64: 15, 512>}, {pipeline_mode = #tpu.pipeline_mode<synchronous>, transform_indices = @transform_5, window_bounds = array<i64: 9, 8, 16>}, {pipeline_mode = #tpu.pipeline_mode<synchronous>, transform_indices = @transform_6, window_bounds = array<i64: 8, 1>}, {pipeline_mode = #tpu.pipeline_mode<synchronous>, transform_indices = @transform_7, window_bounds = array<i64: 9, 8, 8>}, {pipeline_mode = #tpu.pipeline_mode<synchronous>, transform_indices = @transform_8, window_bounds = array<i64: 8, 1>}, {transform_indices = @transform_9, window_bounds = array<i64: 1, 8, 512>}]} {
    %c0 = arith.constant 0 : index
    %c0_0 = arith.constant 0 : index
    %0 = vector.load %arg5[%c0, %c0_0] : memref<15x512xf32, #tpu.memory_space<vmem>>, vector<15x512xf32>
    %c0_1 = arith.constant 0 : index
    %c0_2 = arith.constant 0 : index
    %c0_3 = arith.constant 0 : index
    %1 = vector.load %arg1[%c0_1, %c0_2, %c0_3] : memref<1x16x512xbf16, #tpu.memory_space<vmem>>, vector<1x16x512xbf16>
    %2 = vector.shape_cast %1 : vector<1x16x512xbf16> to vector<16x512xbf16>
    %3 = arith.extf %2 : vector<16x512xbf16> to vector<16x512xf32>
    %c0_4 = arith.constant 0 : index
    %c0_5 = arith.constant 0 : index
    %c0_6 = arith.constant 0 : index
    %4 = vector.load %arg2[%c0_4, %c0_5, %c0_6] : memref<1x8x512xbf16, #tpu.memory_space<vmem>>, vector<1x8x512xbf16>
    %5 = vector.shape_cast %4 : vector<1x8x512xbf16> to vector<8x512xbf16>
    %6 = arith.extf %5 : vector<8x512xbf16> to vector<8x512xf32>
    %c0_7 = arith.constant 0 : index
    %c0_8 = arith.constant 0 : index
    %7 = vector.load %arg4[%c0_7, %c0_8] : memref<8x1xf32, #tpu.memory_space<vmem>>, vector<8x1xf32>
    %8 = vector.extract_strided_slice %0 {offsets = [0, 0], sizes = [1, 512], strides = [1, 1]} : vector<15x512xf32> to vector<1x512xf32>
    %9 = vector.broadcast %7 : vector<8x1xf32> to vector<8x512xf32>
    %10 = vector.broadcast %8 : vector<1x512xf32> to vector<8x512xf32>
    %11 = arith.mulf %9, %10 : vector<8x512xf32>
    %c0_9 = arith.constant 0 : index
    %c0_10 = arith.constant 0 : index
    %c0_11 = arith.constant 0 : index
    %12 = vector.load %arg3[%c0_9, %c0_10, %c0_11] : memref<4x8x16xbf16, #tpu.memory_space<vmem>>, vector<1x8x16xbf16>
    %13 = vector.shape_cast %12 : vector<1x8x16xbf16> to vector<8x16xbf16>
    %14 = arith.truncf %3 : vector<16x512xf32> to vector<16x512xbf16>
    %cst = arith.constant dense<0.000000e+00> : vector<8x512xf32>
    %15 = tpu.matmul %13, %14, %cst {dimension_numbers = #tpu.dot_dimension_numbers<[1], [0], [0], [1], [0, 0, 1, 1], [], []>} : vector<8x16xbf16>, vector<16x512xbf16>, vector<8x512xf32> -> vector<8x512xf32>
    %16 = arith.addf %11, %15 : vector<8x512xf32>
    %c1_i32 = arith.constant 1 : i32
    %17 = tpu.dynamic_rotate %3 by %c1_i32 dim 1 : vector<16x512xf32>, i32 -> vector<16x512xf32>
    %18 = vector.extract_strided_slice %0 {offsets = [1, 0], sizes = [1, 512], strides = [1, 1]} : vector<15x512xf32> to vector<1x512xf32>
    %19 = vector.broadcast %18 : vector<1x512xf32> to vector<16x512xf32>
    %20 = arith.mulf %17, %19 : vector<16x512xf32>
    %c1 = arith.constant 1 : index
    %c0_12 = arith.constant 0 : index
    %c0_13 = arith.constant 0 : index
    %21 = vector.load %arg3[%c1, %c0_12, %c0_13] : memref<4x8x16xbf16, #tpu.memory_space<vmem>>, vector<1x8x16xbf16>
    %22 = vector.shape_cast %21 : vector<1x8x16xbf16> to vector<8x16xbf16>
    %23 = arith.truncf %20 : vector<16x512xf32> to vector<16x512xbf16>
    %cst_14 = arith.constant dense<0.000000e+00> : vector<8x512xf32>
    %24 = tpu.matmul %22, %23, %cst_14 {dimension_numbers = #tpu.dot_dimension_numbers<[1], [0], [0], [1], [0, 0, 1, 1], [], []>} : vector<8x16xbf16>, vector<16x512xbf16>, vector<8x512xf32> -> vector<8x512xf32>
    %25 = arith.addf %16, %24 : vector<8x512xf32>
    %c16_i32 = arith.constant 16 : i32
    %26 = tpu.dynamic_rotate %3 by %c16_i32 dim 1 : vector<16x512xf32>, i32 -> vector<16x512xf32>
    %27 = vector.extract_strided_slice %0 {offsets = [2, 0], sizes = [1, 512], strides = [1, 1]} : vector<15x512xf32> to vector<1x512xf32>
    %28 = vector.broadcast %27 : vector<1x512xf32> to vector<16x512xf32>
    %29 = arith.mulf %26, %28 : vector<16x512xf32>
    %c2 = arith.constant 2 : index
    %c0_15 = arith.constant 0 : index
    %c0_16 = arith.constant 0 : index
    %30 = vector.load %arg3[%c2, %c0_15, %c0_16] : memref<4x8x16xbf16, #tpu.memory_space<vmem>>, vector<1x8x16xbf16>
    %31 = vector.shape_cast %30 : vector<1x8x16xbf16> to vector<8x16xbf16>
    %32 = arith.truncf %29 : vector<16x512xf32> to vector<16x512xbf16>
    %cst_17 = arith.constant dense<0.000000e+00> : vector<8x512xf32>
    %33 = tpu.matmul %31, %32, %cst_17 {dimension_numbers = #tpu.dot_dimension_numbers<[1], [0], [0], [1], [0, 0, 1, 1], [], []>} : vector<8x16xbf16>, vector<16x512xbf16>, vector<8x512xf32> -> vector<8x512xf32>
    %34 = arith.addf %25, %33 : vector<8x512xf32>
    %c17_i32 = arith.constant 17 : i32
    %35 = tpu.dynamic_rotate %3 by %c17_i32 dim 1 : vector<16x512xf32>, i32 -> vector<16x512xf32>
    %36 = vector.extract_strided_slice %0 {offsets = [3, 0], sizes = [1, 512], strides = [1, 1]} : vector<15x512xf32> to vector<1x512xf32>
    %37 = vector.broadcast %36 : vector<1x512xf32> to vector<16x512xf32>
    %38 = arith.mulf %35, %37 : vector<16x512xf32>
    %c3 = arith.constant 3 : index
    %c0_18 = arith.constant 0 : index
    %c0_19 = arith.constant 0 : index
    %39 = vector.load %arg3[%c3, %c0_18, %c0_19] : memref<4x8x16xbf16, #tpu.memory_space<vmem>>, vector<1x8x16xbf16>
    %40 = vector.shape_cast %39 : vector<1x8x16xbf16> to vector<8x16xbf16>
    %41 = arith.truncf %38 : vector<16x512xf32> to vector<16x512xbf16>
    %cst_20 = arith.constant dense<0.000000e+00> : vector<8x512xf32>
    %42 = tpu.matmul %40, %41, %cst_20 {dimension_numbers = #tpu.dot_dimension_numbers<[1], [0], [0], [1], [0, 0, 1, 1], [], []>} : vector<8x16xbf16>, vector<16x512xbf16>, vector<8x512xf32> -> vector<8x512xf32>
    %43 = arith.addf %34, %42 : vector<8x512xf32>
    %44 = tpu.concatenate %6, %43 in 0 : vector<8x512xf32>, vector<8x512xf32> -> vector<16x512xf32>
    %cst_21 = arith.constant 0.000000e+00 : f32
    %45 = vector.broadcast %cst_21 : f32 to vector<8x512xf32>
    %c0_22 = arith.constant 0 : index
    %c0_23 = arith.constant 0 : index
    %46 = vector.load %arg7[%c0_22, %c0_23] : memref<8x1xf32, #tpu.memory_space<vmem>>, vector<8x1xf32>
    %47 = vector.broadcast %46 : vector<8x1xf32> to vector<8x512xf32>
    %48 = arith.addf %45, %47 : vector<8x512xf32>
    %c17_i32_24 = arith.constant 17 : i32
    %49 = tpu.dynamic_rotate %44 by %c17_i32_24 dim 1 : vector<16x512xf32>, i32 -> vector<16x512xf32>
    %50 = vector.extract_strided_slice %0 {offsets = [4, 0], sizes = [1, 512], strides = [1, 1]} : vector<15x512xf32> to vector<1x512xf32>
    %51 = vector.broadcast %50 : vector<1x512xf32> to vector<16x512xf32>
    %52 = arith.mulf %49, %51 : vector<16x512xf32>
    %c0_25 = arith.constant 0 : index
    %c0_26 = arith.constant 0 : index
    %c0_27 = arith.constant 0 : index
    %53 = vector.load %arg6[%c0_25, %c0_26, %c0_27] : memref<9x8x16xbf16, #tpu.memory_space<vmem>>, vector<1x8x16xbf16>
    %54 = vector.shape_cast %53 : vector<1x8x16xbf16> to vector<8x16xbf16>
    %55 = arith.truncf %52 : vector<16x512xf32> to vector<16x512xbf16>
    %cst_28 = arith.constant dense<0.000000e+00> : vector<8x512xf32>
    %56 = tpu.matmul %54, %55, %cst_28 {dimension_numbers = #tpu.dot_dimension_numbers<[1], [0], [0], [1], [0, 0, 1, 1], [], []>} : vector<8x16xbf16>, vector<16x512xbf16>, vector<8x512xf32> -> vector<8x512xf32>
    %57 = arith.addf %48, %56 : vector<8x512xf32>
    %c16_i32_29 = arith.constant 16 : i32
    %58 = tpu.dynamic_rotate %44 by %c16_i32_29 dim 1 : vector<16x512xf32>, i32 -> vector<16x512xf32>
    %59 = vector.extract_strided_slice %0 {offsets = [5, 0], sizes = [1, 512], strides = [1, 1]} : vector<15x512xf32> to vector<1x512xf32>
    %60 = vector.broadcast %59 : vector<1x512xf32> to vector<16x512xf32>
    %61 = arith.mulf %58, %60 : vector<16x512xf32>
    %c1_30 = arith.constant 1 : index
    %c0_31 = arith.constant 0 : index
    %c0_32 = arith.constant 0 : index
    %62 = vector.load %arg6[%c1_30, %c0_31, %c0_32] : memref<9x8x16xbf16, #tpu.memory_space<vmem>>, vector<1x8x16xbf16>
    %63 = vector.shape_cast %62 : vector<1x8x16xbf16> to vector<8x16xbf16>
    %64 = arith.truncf %61 : vector<16x512xf32> to vector<16x512xbf16>
    %cst_33 = arith.constant dense<0.000000e+00> : vector<8x512xf32>
    %65 = tpu.matmul %63, %64, %cst_33 {dimension_numbers = #tpu.dot_dimension_numbers<[1], [0], [0], [1], [0, 0, 1, 1], [], []>} : vector<8x16xbf16>, vector<16x512xbf16>, vector<8x512xf32> -> vector<8x512xf32>
    %66 = arith.addf %57, %65 : vector<8x512xf32>
    %c15_i32 = arith.constant 15 : i32
    %67 = tpu.dynamic_rotate %44 by %c15_i32 dim 1 : vector<16x512xf32>, i32 -> vector<16x512xf32>
    %68 = vector.extract_strided_slice %0 {offsets = [6, 0], sizes = [1, 512], strides = [1, 1]} : vector<15x512xf32> to vector<1x512xf32>
    %69 = vector.broadcast %68 : vector<1x512xf32> to vector<16x512xf32>
    %70 = arith.mulf %67, %69 : vector<16x512xf32>
    %c2_34 = arith.constant 2 : index
    %c0_35 = arith.constant 0 : index
    %c0_36 = arith.constant 0 : index
    %71 = vector.load %arg6[%c2_34, %c0_35, %c0_36] : memref<9x8x16xbf16, #tpu.memory_space<vmem>>, vector<1x8x16xbf16>
    %72 = vector.shape_cast %71 : vector<1x8x16xbf16> to vector<8x16xbf16>
    %73 = arith.truncf %70 : vector<16x512xf32> to vector<16x512xbf16>
    %cst_37 = arith.constant dense<0.000000e+00> : vector<8x512xf32>
    %74 = tpu.matmul %72, %73, %cst_37 {dimension_numbers = #tpu.dot_dimension_numbers<[1], [0], [0], [1], [0, 0, 1, 1], [], []>} : vector<8x16xbf16>, vector<16x512xbf16>, vector<8x512xf32> -> vector<8x512xf32>
    %75 = arith.addf %66, %74 : vector<8x512xf32>
    %c1_i32_38 = arith.constant 1 : i32
    %76 = tpu.dynamic_rotate %44 by %c1_i32_38 dim 1 : vector<16x512xf32>, i32 -> vector<16x512xf32>
    %77 = vector.extract_strided_slice %0 {offsets = [7, 0], sizes = [1, 512], strides = [1, 1]} : vector<15x512xf32> to vector<1x512xf32>
    %78 = vector.broadcast %77 : vector<1x512xf32> to vector<16x512xf32>
    %79 = arith.mulf %76, %78 : vector<16x512xf32>
    %c3_39 = arith.constant 3 : index
    %c0_40 = arith.constant 0 : index
    %c0_41 = arith.constant 0 : index
    %80 = vector.load %arg6[%c3_39, %c0_40, %c0_41] : memref<9x8x16xbf16, #tpu.memory_space<vmem>>, vector<1x8x16xbf16>
    %81 = vector.shape_cast %80 : vector<1x8x16xbf16> to vector<8x16xbf16>
    %82 = arith.truncf %79 : vector<16x512xf32> to vector<16x512xbf16>
    %cst_42 = arith.constant dense<0.000000e+00> : vector<8x512xf32>
    %83 = tpu.matmul %81, %82, %cst_42 {dimension_numbers = #tpu.dot_dimension_numbers<[1], [0], [0], [1], [0, 0, 1, 1], [], []>} : vector<8x16xbf16>, vector<16x512xbf16>, vector<8x512xf32> -> vector<8x512xf32>
    %84 = arith.addf %75, %83 : vector<8x512xf32>
    %c4 = arith.constant 4 : index
    %c0_43 = arith.constant 0 : index
    %c0_44 = arith.constant 0 : index
    %85 = vector.load %arg6[%c4, %c0_43, %c0_44] : memref<9x8x16xbf16, #tpu.memory_space<vmem>>, vector<1x8x16xbf16>
    %86 = vector.shape_cast %85 : vector<1x8x16xbf16> to vector<8x16xbf16>
    %87 = arith.truncf %44 : vector<16x512xf32> to vector<16x512xbf16>
    %cst_45 = arith.constant dense<0.000000e+00> : vector<8x512xf32>
    %88 = tpu.matmul %86, %87, %cst_45 {dimension_numbers = #tpu.dot_dimension_numbers<[1], [0], [0], [1], [0, 0, 1, 1], [], []>} : vector<8x16xbf16>, vector<16x512xbf16>, vector<8x512xf32> -> vector<8x512xf32>
    %89 = arith.addf %84, %88 : vector<8x512xf32>
    %c511_i32 = arith.constant 511 : i32
    %90 = tpu.dynamic_rotate %44 by %c511_i32 dim 1 : vector<16x512xf32>, i32 -> vector<16x512xf32>
    %91 = vector.extract_strided_slice %0 {offsets = [9, 0], sizes = [1, 512], strides = [1, 1]} : vector<15x512xf32> to vector<1x512xf32>
    %92 = vector.broadcast %91 : vector<1x512xf32> to vector<16x512xf32>
    %93 = arith.mulf %90, %92 : vector<16x512xf32>
    %c5 = arith.constant 5 : index
    %c0_46 = arith.constant 0 : index
    %c0_47 = arith.constant 0 : index
    %94 = vector.load %arg6[%c5, %c0_46, %c0_47] : memref<9x8x16xbf16, #tpu.memory_space<vmem>>, vector<1x8x16xbf16>
    %95 = vector.shape_cast %94 : vector<1x8x16xbf16> to vector<8x16xbf16>
    %96 = arith.truncf %93 : vector<16x512xf32> to vector<16x512xbf16>
    %cst_48 = arith.constant dense<0.000000e+00> : vector<8x512xf32>
    %97 = tpu.matmul %95, %96, %cst_48 {dimension_numbers = #tpu.dot_dimension_numbers<[1], [0], [0], [1], [0, 0, 1, 1], [], []>} : vector<8x16xbf16>, vector<16x512xbf16>, vector<8x512xf32> -> vector<8x512xf32>
    %98 = arith.addf %89, %97 : vector<8x512xf32>
    %c497_i32 = arith.constant 497 : i32
    %99 = tpu.dynamic_rotate %44 by %c497_i32 dim 1 : vector<16x512xf32>, i32 -> vector<16x512xf32>
    %100 = vector.extract_strided_slice %0 {offsets = [10, 0], sizes = [1, 512], strides = [1, 1]} : vector<15x512xf32> to vector<1x512xf32>
    %101 = vector.broadcast %100 : vector<1x512xf32> to vector<16x512xf32>
    %102 = arith.mulf %99, %101 : vector<16x512xf32>
    %c6 = arith.constant 6 : index
    %c0_49 = arith.constant 0 : index
    %c0_50 = arith.constant 0 : index
    %103 = vector.load %arg6[%c6, %c0_49, %c0_50] : memref<9x8x16xbf16, #tpu.memory_space<vmem>>, vector<1x8x16xbf16>
    %104 = vector.shape_cast %103 : vector<1x8x16xbf16> to vector<8x16xbf16>
    %105 = arith.truncf %102 : vector<16x512xf32> to vector<16x512xbf16>
    %cst_51 = arith.constant dense<0.000000e+00> : vector<8x512xf32>
    %106 = tpu.matmul %104, %105, %cst_51 {dimension_numbers = #tpu.dot_dimension_numbers<[1], [0], [0], [1], [0, 0, 1, 1], [], []>} : vector<8x16xbf16>, vector<16x512xbf16>, vector<8x512xf32> -> vector<8x512xf32>
    %107 = arith.addf %98, %106 : vector<8x512xf32>
    %c496_i32 = arith.constant 496 : i32
    %108 = tpu.dynamic_rotate %44 by %c496_i32 dim 1 : vector<16x512xf32>, i32 -> vector<16x512xf32>
    %109 = vector.extract_strided_slice %0 {offsets = [11, 0], sizes = [1, 512], strides = [1, 1]} : vector<15x512xf32> to vector<1x512xf32>
    %110 = vector.broadcast %109 : vector<1x512xf32> to vector<16x512xf32>
    %111 = arith.mulf %108, %110 : vector<16x512xf32>
    %c7 = arith.constant 7 : index
    %c0_52 = arith.constant 0 : index
    %c0_53 = arith.constant 0 : index
    %112 = vector.load %arg6[%c7, %c0_52, %c0_53] : memref<9x8x16xbf16, #tpu.memory_space<vmem>>, vector<1x8x16xbf16>
    %113 = vector.shape_cast %112 : vector<1x8x16xbf16> to vector<8x16xbf16>
    %114 = arith.truncf %111 : vector<16x512xf32> to vector<16x512xbf16>
    %cst_54 = arith.constant dense<0.000000e+00> : vector<8x512xf32>
    %115 = tpu.matmul %113, %114, %cst_54 {dimension_numbers = #tpu.dot_dimension_numbers<[1], [0], [0], [1], [0, 0, 1, 1], [], []>} : vector<8x16xbf16>, vector<16x512xbf16>, vector<8x512xf32> -> vector<8x512xf32>
    %116 = arith.addf %107, %115 : vector<8x512xf32>
    %c495_i32 = arith.constant 495 : i32
    %117 = tpu.dynamic_rotate %44 by %c495_i32 dim 1 : vector<16x512xf32>, i32 -> vector<16x512xf32>
    %118 = vector.extract_strided_slice %0 {offsets = [12, 0], sizes = [1, 512], strides = [1, 1]} : vector<15x512xf32> to vector<1x512xf32>
    %119 = vector.broadcast %118 : vector<1x512xf32> to vector<16x512xf32>
    %120 = arith.mulf %117, %119 : vector<16x512xf32>
    %c8 = arith.constant 8 : index
    %c0_55 = arith.constant 0 : index
    %c0_56 = arith.constant 0 : index
    %121 = vector.load %arg6[%c8, %c0_55, %c0_56] : memref<9x8x16xbf16, #tpu.memory_space<vmem>>, vector<1x8x16xbf16>
    %122 = vector.shape_cast %121 : vector<1x8x16xbf16> to vector<8x16xbf16>
    %123 = arith.truncf %120 : vector<16x512xf32> to vector<16x512xbf16>
    %cst_57 = arith.constant dense<0.000000e+00> : vector<8x512xf32>
    %124 = tpu.matmul %122, %123, %cst_57 {dimension_numbers = #tpu.dot_dimension_numbers<[1], [0], [0], [1], [0, 0, 1, 1], [], []>} : vector<8x16xbf16>, vector<16x512xbf16>, vector<8x512xf32> -> vector<8x512xf32>
    %125 = arith.addf %116, %124 : vector<8x512xf32>
    %cst_58 = arith.constant 0.000000e+00 : f32
    %126 = vector.broadcast %cst_58 : f32 to vector<8x512xf32>
    %127 = vector.extract_strided_slice %0 {offsets = [13, 0], sizes = [1, 512], strides = [1, 1]} : vector<15x512xf32> to vector<1x512xf32>
    %128 = vector.broadcast %127 : vector<1x512xf32> to vector<8x512xf32>
    %129 = arith.mulf %125, %128 : vector<8x512xf32>
    %cst_59 = arith.constant dense<0.000000e+00> : vector<8xf32>
    %130 = vector.multi_reduction <add>, %129, %cst_59 [1] : vector<8x512xf32> to vector<8xf32>
    %131 = vector.shape_cast %130 : vector<8xf32> to vector<8x1xf32>
    %cst_60 = arith.constant 3.906250e-03 : f32
    %132 = vector.broadcast %cst_60 : f32 to vector<8x1xf32>
    %133 = arith.mulf %131, %132 : vector<8x1xf32>
    %134 = vector.broadcast %127 : vector<1x512xf32> to vector<8x512xf32>
    %135 = vector.broadcast %133 : vector<8x1xf32> to vector<8x512xf32>
    %136 = arith.mulf %134, %135 : vector<8x512xf32>
    %137 = arith.addf %126, %136 : vector<8x512xf32>
    %138 = vector.extract_strided_slice %0 {offsets = [14, 0], sizes = [1, 512], strides = [1, 1]} : vector<15x512xf32> to vector<1x512xf32>
    %139 = vector.broadcast %138 : vector<1x512xf32> to vector<8x512xf32>
    %140 = arith.mulf %125, %139 : vector<8x512xf32>
    %cst_61 = arith.constant dense<0.000000e+00> : vector<8xf32>
    %141 = vector.multi_reduction <add>, %140, %cst_61 [1] : vector<8x512xf32> to vector<8xf32>
    %142 = vector.shape_cast %141 : vector<8xf32> to vector<8x1xf32>
    %cst_62 = arith.constant 3.906250e-03 : f32
    %143 = vector.broadcast %cst_62 : f32 to vector<8x1xf32>
    %144 = arith.mulf %142, %143 : vector<8x1xf32>
    %145 = vector.broadcast %138 : vector<1x512xf32> to vector<8x512xf32>
    %146 = vector.broadcast %144 : vector<8x1xf32> to vector<8x512xf32>
    %147 = arith.mulf %145, %146 : vector<8x512xf32>
    %148 = arith.addf %137, %147 : vector<8x512xf32>
    %149 = arith.subf %125, %148 : vector<8x512xf32>
    %150 = arith.mulf %149, %149 : vector<8x512xf32>
    %cst_63 = arith.constant 0.000000e+00 : f32
    %151 = vector.broadcast %cst_63 : f32 to vector<8x512xf32>
    %152 = vector.extract_strided_slice %0 {offsets = [13, 0], sizes = [1, 512], strides = [1, 1]} : vector<15x512xf32> to vector<1x512xf32>
    %153 = vector.broadcast %152 : vector<1x512xf32> to vector<8x512xf32>
    %154 = arith.mulf %150, %153 : vector<8x512xf32>
    %cst_64 = arith.constant dense<0.000000e+00> : vector<8xf32>
    %155 = vector.multi_reduction <add>, %154, %cst_64 [1] : vector<8x512xf32> to vector<8xf32>
    %156 = vector.shape_cast %155 : vector<8xf32> to vector<8x1xf32>
    %cst_65 = arith.constant 3.906250e-03 : f32
    %157 = vector.broadcast %cst_65 : f32 to vector<8x1xf32>
    %158 = arith.mulf %156, %157 : vector<8x1xf32>
    %cst_66 = arith.constant 9.99999974E-6 : f32
    %159 = vector.broadcast %cst_66 : f32 to vector<8x1xf32>
    %160 = arith.addf %158, %159 : vector<8x1xf32>
    %161 = math.rsqrt %160 : vector<8x1xf32>
    %162 = vector.broadcast %152 : vector<1x512xf32> to vector<8x512xf32>
    %163 = vector.broadcast %161 : vector<8x1xf32> to vector<8x512xf32>
    %164 = arith.mulf %162, %163 : vector<8x512xf32>
    %165 = arith.addf %151, %164 : vector<8x512xf32>
    %166 = vector.extract_strided_slice %0 {offsets = [14, 0], sizes = [1, 512], strides = [1, 1]} : vector<15x512xf32> to vector<1x512xf32>
    %167 = vector.broadcast %166 : vector<1x512xf32> to vector<8x512xf32>
    %168 = arith.mulf %150, %167 : vector<8x512xf32>
    %cst_67 = arith.constant dense<0.000000e+00> : vector<8xf32>
    %169 = vector.multi_reduction <add>, %168, %cst_67 [1] : vector<8x512xf32> to vector<8xf32>
    %170 = vector.shape_cast %169 : vector<8xf32> to vector<8x1xf32>
    %cst_68 = arith.constant 3.906250e-03 : f32
    %171 = vector.broadcast %cst_68 : f32 to vector<8x1xf32>
    %172 = arith.mulf %170, %171 : vector<8x1xf32>
    %cst_69 = arith.constant 9.99999974E-6 : f32
    %173 = vector.broadcast %cst_69 : f32 to vector<8x1xf32>
    %174 = arith.addf %172, %173 : vector<8x1xf32>
    %175 = math.rsqrt %174 : vector<8x1xf32>
    %176 = vector.broadcast %166 : vector<1x512xf32> to vector<8x512xf32>
    %177 = vector.broadcast %175 : vector<8x1xf32> to vector<8x512xf32>
    %178 = arith.mulf %176, %177 : vector<8x512xf32>
    %179 = arith.addf %165, %178 : vector<8x512xf32>
    %180 = arith.mulf %149, %179 : vector<8x512xf32>
    %cst_70 = arith.constant 0.00999999977 : f32
    %181 = vector.broadcast %cst_70 : f32 to vector<8x512xf32>
    %182 = arith.mulf %181, %180 : vector<8x512xf32>
    %183 = arith.maximumf %180, %182 : vector<8x512xf32>
    %cst_71 = arith.constant 0.000000e+00 : f32
    %184 = vector.broadcast %cst_71 : f32 to vector<8x512xf32>
    %c0_72 = arith.constant 0 : index
    %c0_73 = arith.constant 0 : index
    %185 = vector.load %arg9[%c0_72, %c0_73] : memref<8x1xf32, #tpu.memory_space<vmem>>, vector<8x1xf32>
    %186 = vector.broadcast %185 : vector<8x1xf32> to vector<8x512xf32>
    %187 = arith.addf %184, %186 : vector<8x512xf32>
    %c17_i32_74 = arith.constant 17 : i32
    %188 = tpu.dynamic_rotate %183 by %c17_i32_74 dim 1 : vector<8x512xf32>, i32 -> vector<8x512xf32>
    %189 = vector.extract_strided_slice %0 {offsets = [4, 0], sizes = [1, 512], strides = [1, 1]} : vector<15x512xf32> to vector<1x512xf32>
    %190 = vector.broadcast %189 : vector<1x512xf32> to vector<8x512xf32>
    %191 = arith.mulf %188, %190 : vector<8x512xf32>
    %c0_75 = arith.constant 0 : index
    %c0_76 = arith.constant 0 : index
    %c0_77 = arith.constant 0 : index
    %192 = vector.load %arg8[%c0_75, %c0_76, %c0_77] : memref<9x8x8xbf16, #tpu.memory_space<vmem>>, vector<1x8x8xbf16>
    %193 = vector.shape_cast %192 : vector<1x8x8xbf16> to vector<8x8xbf16>
    %194 = arith.truncf %191 : vector<8x512xf32> to vector<8x512xbf16>
    %cst_78 = arith.constant dense<0.000000e+00> : vector<8x512xf32>
    %195 = tpu.matmul %193, %194, %cst_78 {dimension_numbers = #tpu.dot_dimension_numbers<[1], [0], [0], [1], [0, 0, 1, 1], [], []>} : vector<8x8xbf16>, vector<8x512xbf16>, vector<8x512xf32> -> vector<8x512xf32>
    %196 = arith.addf %187, %195 : vector<8x512xf32>
    %c16_i32_79 = arith.constant 16 : i32
    %197 = tpu.dynamic_rotate %183 by %c16_i32_79 dim 1 : vector<8x512xf32>, i32 -> vector<8x512xf32>
    %198 = vector.extract_strided_slice %0 {offsets = [5, 0], sizes = [1, 512], strides = [1, 1]} : vector<15x512xf32> to vector<1x512xf32>
    %199 = vector.broadcast %198 : vector<1x512xf32> to vector<8x512xf32>
    %200 = arith.mulf %197, %199 : vector<8x512xf32>
    %c1_80 = arith.constant 1 : index
    %c0_81 = arith.constant 0 : index
    %c0_82 = arith.constant 0 : index
    %201 = vector.load %arg8[%c1_80, %c0_81, %c0_82] : memref<9x8x8xbf16, #tpu.memory_space<vmem>>, vector<1x8x8xbf16>
    %202 = vector.shape_cast %201 : vector<1x8x8xbf16> to vector<8x8xbf16>
    %203 = arith.truncf %200 : vector<8x512xf32> to vector<8x512xbf16>
    %cst_83 = arith.constant dense<0.000000e+00> : vector<8x512xf32>
    %204 = tpu.matmul %202, %203, %cst_83 {dimension_numbers = #tpu.dot_dimension_numbers<[1], [0], [0], [1], [0, 0, 1, 1], [], []>} : vector<8x8xbf16>, vector<8x512xbf16>, vector<8x512xf32> -> vector<8x512xf32>
    %205 = arith.addf %196, %204 : vector<8x512xf32>
    %c15_i32_84 = arith.constant 15 : i32
    %206 = tpu.dynamic_rotate %183 by %c15_i32_84 dim 1 : vector<8x512xf32>, i32 -> vector<8x512xf32>
    %207 = vector.extract_strided_slice %0 {offsets = [6, 0], sizes = [1, 512], strides = [1, 1]} : vector<15x512xf32> to vector<1x512xf32>
    %208 = vector.broadcast %207 : vector<1x512xf32> to vector<8x512xf32>
    %209 = arith.mulf %206, %208 : vector<8x512xf32>
    %c2_85 = arith.constant 2 : index
    %c0_86 = arith.constant 0 : index
    %c0_87 = arith.constant 0 : index
    %210 = vector.load %arg8[%c2_85, %c0_86, %c0_87] : memref<9x8x8xbf16, #tpu.memory_space<vmem>>, vector<1x8x8xbf16>
    %211 = vector.shape_cast %210 : vector<1x8x8xbf16> to vector<8x8xbf16>
    %212 = arith.truncf %209 : vector<8x512xf32> to vector<8x512xbf16>
    %cst_88 = arith.constant dense<0.000000e+00> : vector<8x512xf32>
    %213 = tpu.matmul %211, %212, %cst_88 {dimension_numbers = #tpu.dot_dimension_numbers<[1], [0], [0], [1], [0, 0, 1, 1], [], []>} : vector<8x8xbf16>, vector<8x512xbf16>, vector<8x512xf32> -> vector<8x512xf32>
    %214 = arith.addf %205, %213 : vector<8x512xf32>
    %c1_i32_89 = arith.constant 1 : i32
    %215 = tpu.dynamic_rotate %183 by %c1_i32_89 dim 1 : vector<8x512xf32>, i32 -> vector<8x512xf32>
    %216 = vector.extract_strided_slice %0 {offsets = [7, 0], sizes = [1, 512], strides = [1, 1]} : vector<15x512xf32> to vector<1x512xf32>
    %217 = vector.broadcast %216 : vector<1x512xf32> to vector<8x512xf32>
    %218 = arith.mulf %215, %217 : vector<8x512xf32>
    %c3_90 = arith.constant 3 : index
    %c0_91 = arith.constant 0 : index
    %c0_92 = arith.constant 0 : index
    %219 = vector.load %arg8[%c3_90, %c0_91, %c0_92] : memref<9x8x8xbf16, #tpu.memory_space<vmem>>, vector<1x8x8xbf16>
    %220 = vector.shape_cast %219 : vector<1x8x8xbf16> to vector<8x8xbf16>
    %221 = arith.truncf %218 : vector<8x512xf32> to vector<8x512xbf16>
    %cst_93 = arith.constant dense<0.000000e+00> : vector<8x512xf32>
    %222 = tpu.matmul %220, %221, %cst_93 {dimension_numbers = #tpu.dot_dimension_numbers<[1], [0], [0], [1], [0, 0, 1, 1], [], []>} : vector<8x8xbf16>, vector<8x512xbf16>, vector<8x512xf32> -> vector<8x512xf32>
    %223 = arith.addf %214, %222 : vector<8x512xf32>
    %c4_94 = arith.constant 4 : index
    %c0_95 = arith.constant 0 : index
    %c0_96 = arith.constant 0 : index
    %224 = vector.load %arg8[%c4_94, %c0_95, %c0_96] : memref<9x8x8xbf16, #tpu.memory_space<vmem>>, vector<1x8x8xbf16>
    %225 = vector.shape_cast %224 : vector<1x8x8xbf16> to vector<8x8xbf16>
    %226 = arith.truncf %183 : vector<8x512xf32> to vector<8x512xbf16>
    %cst_97 = arith.constant dense<0.000000e+00> : vector<8x512xf32>
    %227 = tpu.matmul %225, %226, %cst_97 {dimension_numbers = #tpu.dot_dimension_numbers<[1], [0], [0], [1], [0, 0, 1, 1], [], []>} : vector<8x8xbf16>, vector<8x512xbf16>, vector<8x512xf32> -> vector<8x512xf32>
    %228 = arith.addf %223, %227 : vector<8x512xf32>
    %c511_i32_98 = arith.constant 511 : i32
    %229 = tpu.dynamic_rotate %183 by %c511_i32_98 dim 1 : vector<8x512xf32>, i32 -> vector<8x512xf32>
    %230 = vector.extract_strided_slice %0 {offsets = [9, 0], sizes = [1, 512], strides = [1, 1]} : vector<15x512xf32> to vector<1x512xf32>
    %231 = vector.broadcast %230 : vector<1x512xf32> to vector<8x512xf32>
    %232 = arith.mulf %229, %231 : vector<8x512xf32>
    %c5_99 = arith.constant 5 : index
    %c0_100 = arith.constant 0 : index
    %c0_101 = arith.constant 0 : index
    %233 = vector.load %arg8[%c5_99, %c0_100, %c0_101] : memref<9x8x8xbf16, #tpu.memory_space<vmem>>, vector<1x8x8xbf16>
    %234 = vector.shape_cast %233 : vector<1x8x8xbf16> to vector<8x8xbf16>
    %235 = arith.truncf %232 : vector<8x512xf32> to vector<8x512xbf16>
    %cst_102 = arith.constant dense<0.000000e+00> : vector<8x512xf32>
    %236 = tpu.matmul %234, %235, %cst_102 {dimension_numbers = #tpu.dot_dimension_numbers<[1], [0], [0], [1], [0, 0, 1, 1], [], []>} : vector<8x8xbf16>, vector<8x512xbf16>, vector<8x512xf32> -> vector<8x512xf32>
    %237 = arith.addf %228, %236 : vector<8x512xf32>
    %c497_i32_103 = arith.constant 497 : i32
    %238 = tpu.dynamic_rotate %183 by %c497_i32_103 dim 1 : vector<8x512xf32>, i32 -> vector<8x512xf32>
    %239 = vector.extract_strided_slice %0 {offsets = [10, 0], sizes = [1, 512], strides = [1, 1]} : vector<15x512xf32> to vector<1x512xf32>
    %240 = vector.broadcast %239 : vector<1x512xf32> to vector<8x512xf32>
    %241 = arith.mulf %238, %240 : vector<8x512xf32>
    %c6_104 = arith.constant 6 : index
    %c0_105 = arith.constant 0 : index
    %c0_106 = arith.constant 0 : index
    %242 = vector.load %arg8[%c6_104, %c0_105, %c0_106] : memref<9x8x8xbf16, #tpu.memory_space<vmem>>, vector<1x8x8xbf16>
    %243 = vector.shape_cast %242 : vector<1x8x8xbf16> to vector<8x8xbf16>
    %244 = arith.truncf %241 : vector<8x512xf32> to vector<8x512xbf16>
    %cst_107 = arith.constant dense<0.000000e+00> : vector<8x512xf32>
    %245 = tpu.matmul %243, %244, %cst_107 {dimension_numbers = #tpu.dot_dimension_numbers<[1], [0], [0], [1], [0, 0, 1, 1], [], []>} : vector<8x8xbf16>, vector<8x512xbf16>, vector<8x512xf32> -> vector<8x512xf32>
    %246 = arith.addf %237, %245 : vector<8x512xf32>
    %c496_i32_108 = arith.constant 496 : i32
    %247 = tpu.dynamic_rotate %183 by %c496_i32_108 dim 1 : vector<8x512xf32>, i32 -> vector<8x512xf32>
    %248 = vector.extract_strided_slice %0 {offsets = [11, 0], sizes = [1, 512], strides = [1, 1]} : vector<15x512xf32> to vector<1x512xf32>
    %249 = vector.broadcast %248 : vector<1x512xf32> to vector<8x512xf32>
    %250 = arith.mulf %247, %249 : vector<8x512xf32>
    %c7_109 = arith.constant 7 : index
    %c0_110 = arith.constant 0 : index
    %c0_111 = arith.constant 0 : index
    %251 = vector.load %arg8[%c7_109, %c0_110, %c0_111] : memref<9x8x8xbf16, #tpu.memory_space<vmem>>, vector<1x8x8xbf16>
    %252 = vector.shape_cast %251 : vector<1x8x8xbf16> to vector<8x8xbf16>
    %253 = arith.truncf %250 : vector<8x512xf32> to vector<8x512xbf16>
    %cst_112 = arith.constant dense<0.000000e+00> : vector<8x512xf32>
    %254 = tpu.matmul %252, %253, %cst_112 {dimension_numbers = #tpu.dot_dimension_numbers<[1], [0], [0], [1], [0, 0, 1, 1], [], []>} : vector<8x8xbf16>, vector<8x512xbf16>, vector<8x512xf32> -> vector<8x512xf32>
    %255 = arith.addf %246, %254 : vector<8x512xf32>
    %c495_i32_113 = arith.constant 495 : i32
    %256 = tpu.dynamic_rotate %183 by %c495_i32_113 dim 1 : vector<8x512xf32>, i32 -> vector<8x512xf32>
    %257 = vector.extract_strided_slice %0 {offsets = [12, 0], sizes = [1, 512], strides = [1, 1]} : vector<15x512xf32> to vector<1x512xf32>
    %258 = vector.broadcast %257 : vector<1x512xf32> to vector<8x512xf32>
    %259 = arith.mulf %256, %258 : vector<8x512xf32>
    %c8_114 = arith.constant 8 : index
    %c0_115 = arith.constant 0 : index
    %c0_116 = arith.constant 0 : index
    %260 = vector.load %arg8[%c8_114, %c0_115, %c0_116] : memref<9x8x8xbf16, #tpu.memory_space<vmem>>, vector<1x8x8xbf16>
    %261 = vector.shape_cast %260 : vector<1x8x8xbf16> to vector<8x8xbf16>
    %262 = arith.truncf %259 : vector<8x512xf32> to vector<8x512xbf16>
    %cst_117 = arith.constant dense<0.000000e+00> : vector<8x512xf32>
    %263 = tpu.matmul %261, %262, %cst_117 {dimension_numbers = #tpu.dot_dimension_numbers<[1], [0], [0], [1], [0, 0, 1, 1], [], []>} : vector<8x8xbf16>, vector<8x512xbf16>, vector<8x512xf32> -> vector<8x512xf32>
    %264 = arith.addf %255, %263 : vector<8x512xf32>
    %cst_118 = arith.constant 0.000000e+00 : f32
    %265 = vector.broadcast %cst_118 : f32 to vector<8x512xf32>
    %266 = vector.extract_strided_slice %0 {offsets = [13, 0], sizes = [1, 512], strides = [1, 1]} : vector<15x512xf32> to vector<1x512xf32>
    %267 = vector.broadcast %266 : vector<1x512xf32> to vector<8x512xf32>
    %268 = arith.mulf %264, %267 : vector<8x512xf32>
    %cst_119 = arith.constant dense<0.000000e+00> : vector<8xf32>
    %269 = vector.multi_reduction <add>, %268, %cst_119 [1] : vector<8x512xf32> to vector<8xf32>
    %270 = vector.shape_cast %269 : vector<8xf32> to vector<8x1xf32>
    %cst_120 = arith.constant 3.906250e-03 : f32
    %271 = vector.broadcast %cst_120 : f32 to vector<8x1xf32>
    %272 = arith.mulf %270, %271 : vector<8x1xf32>
    %273 = vector.broadcast %266 : vector<1x512xf32> to vector<8x512xf32>
    %274 = vector.broadcast %272 : vector<8x1xf32> to vector<8x512xf32>
    %275 = arith.mulf %273, %274 : vector<8x512xf32>
    %276 = arith.addf %265, %275 : vector<8x512xf32>
    %277 = vector.extract_strided_slice %0 {offsets = [14, 0], sizes = [1, 512], strides = [1, 1]} : vector<15x512xf32> to vector<1x512xf32>
    %278 = vector.broadcast %277 : vector<1x512xf32> to vector<8x512xf32>
    %279 = arith.mulf %264, %278 : vector<8x512xf32>
    %cst_121 = arith.constant dense<0.000000e+00> : vector<8xf32>
    %280 = vector.multi_reduction <add>, %279, %cst_121 [1] : vector<8x512xf32> to vector<8xf32>
    %281 = vector.shape_cast %280 : vector<8xf32> to vector<8x1xf32>
    %cst_122 = arith.constant 3.906250e-03 : f32
    %282 = vector.broadcast %cst_122 : f32 to vector<8x1xf32>
    %283 = arith.mulf %281, %282 : vector<8x1xf32>
    %284 = vector.broadcast %277 : vector<1x512xf32> to vector<8x512xf32>
    %285 = vector.broadcast %283 : vector<8x1xf32> to vector<8x512xf32>
    %286 = arith.mulf %284, %285 : vector<8x512xf32>
    %287 = arith.addf %276, %286 : vector<8x512xf32>
    %288 = arith.subf %264, %287 : vector<8x512xf32>
    %289 = arith.mulf %288, %288 : vector<8x512xf32>
    %cst_123 = arith.constant 0.000000e+00 : f32
    %290 = vector.broadcast %cst_123 : f32 to vector<8x512xf32>
    %291 = vector.extract_strided_slice %0 {offsets = [13, 0], sizes = [1, 512], strides = [1, 1]} : vector<15x512xf32> to vector<1x512xf32>
    %292 = vector.broadcast %291 : vector<1x512xf32> to vector<8x512xf32>
    %293 = arith.mulf %289, %292 : vector<8x512xf32>
    %cst_124 = arith.constant dense<0.000000e+00> : vector<8xf32>
    %294 = vector.multi_reduction <add>, %293, %cst_124 [1] : vector<8x512xf32> to vector<8xf32>
    %295 = vector.shape_cast %294 : vector<8xf32> to vector<8x1xf32>
    %cst_125 = arith.constant 3.906250e-03 : f32
    %296 = vector.broadcast %cst_125 : f32 to vector<8x1xf32>
    %297 = arith.mulf %295, %296 : vector<8x1xf32>
    %cst_126 = arith.constant 9.99999974E-6 : f32
    %298 = vector.broadcast %cst_126 : f32 to vector<8x1xf32>
    %299 = arith.addf %297, %298 : vector<8x1xf32>
    %300 = math.rsqrt %299 : vector<8x1xf32>
    %301 = vector.broadcast %291 : vector<1x512xf32> to vector<8x512xf32>
    %302 = vector.broadcast %300 : vector<8x1xf32> to vector<8x512xf32>
    %303 = arith.mulf %301, %302 : vector<8x512xf32>
    %304 = arith.addf %290, %303 : vector<8x512xf32>
    %305 = vector.extract_strided_slice %0 {offsets = [14, 0], sizes = [1, 512], strides = [1, 1]} : vector<15x512xf32> to vector<1x512xf32>
    %306 = vector.broadcast %305 : vector<1x512xf32> to vector<8x512xf32>
    %307 = arith.mulf %289, %306 : vector<8x512xf32>
    %cst_127 = arith.constant dense<0.000000e+00> : vector<8xf32>
    %308 = vector.multi_reduction <add>, %307, %cst_127 [1] : vector<8x512xf32> to vector<8xf32>
    %309 = vector.shape_cast %308 : vector<8xf32> to vector<8x1xf32>
    %cst_128 = arith.constant 3.906250e-03 : f32
    %310 = vector.broadcast %cst_128 : f32 to vector<8x1xf32>
    %311 = arith.mulf %309, %310 : vector<8x1xf32>
    %cst_129 = arith.constant 9.99999974E-6 : f32
    %312 = vector.broadcast %cst_129 : f32 to vector<8x1xf32>
    %313 = arith.addf %311, %312 : vector<8x1xf32>
    %314 = math.rsqrt %313 : vector<8x1xf32>
    %315 = vector.broadcast %305 : vector<1x512xf32> to vector<8x512xf32>
    %316 = vector.broadcast %314 : vector<8x1xf32> to vector<8x512xf32>
    %317 = arith.mulf %315, %316 : vector<8x512xf32>
    %318 = arith.addf %304, %317 : vector<8x512xf32>
    %319 = arith.mulf %288, %318 : vector<8x512xf32>
    %cst_130 = arith.constant 0.00999999977 : f32
    %320 = vector.broadcast %cst_130 : f32 to vector<8x512xf32>
    %321 = arith.mulf %320, %319 : vector<8x512xf32>
    %322 = arith.maximumf %319, %321 : vector<8x512xf32>
    %c0_131 = arith.constant 0 : index
    %c0_132 = arith.constant 0 : index
    %c0_133 = arith.constant 0 : index
    %323 = vector.load %arg10[%c0_131, %c0_132, %c0_133] : memref<1x8x512xf32, #tpu.memory_space<vmem>>, vector<1x8x512xf32>
    %324 = vector.shape_cast %323 : vector<1x8x512xf32> to vector<8x512xf32>
    %325 = vector.shape_cast %322 : vector<8x512xf32> to vector<1x8x512xf32>
    tpu.vector_store %arg10[%c0_131, %c0_132, %c0_133], %325 {strides = array<i32>} : memref<1x8x512xf32, #tpu.memory_space<vmem>>, vector<1x8x512xf32>,
    return
  }
  func.func @transform_0(%arg0: i32) -> (i32, i32, i32) {
    %c0_i32 = arith.constant 0 : i32
    %c0_i32_0 = arith.constant 0 : i32
    %c0_i32_1 = arith.constant 0 : i32
    return %arg0, %c0_i32, %c0_i32_0 : i32, i32, i32
  }
  func.func @transform_1(%arg0: i32) -> (i32, i32, i32) {
    %c0_i32 = arith.constant 0 : i32
    %c0_i32_0 = arith.constant 0 : i32
    %c0_i32_1 = arith.constant 0 : i32
    return %arg0, %c0_i32, %c0_i32_0 : i32, i32, i32
  }
  func.func @transform_2(%arg0: i32) -> (i32, i32, i32) {
    %c0_i32 = arith.constant 0 : i32
    %c0_i32_0 = arith.constant 0 : i32
    %c0_i32_1 = arith.constant 0 : i32
    %c0_i32_2 = arith.constant 0 : i32
    return %c0_i32, %c0_i32_0, %c0_i32_1 : i32, i32, i32
  }
  func.func @transform_3(%arg0: i32) -> (i32, i32) {
    %c0_i32 = arith.constant 0 : i32
    %c0_i32_0 = arith.constant 0 : i32
    %c0_i32_1 = arith.constant 0 : i32
    return %c0_i32, %c0_i32_0 : i32, i32
  }
  func.func @transform_4(%arg0: i32) -> (i32, i32) {
    %c0_i32 = arith.constant 0 : i32
    %c0_i32_0 = arith.constant 0 : i32
    %c0_i32_1 = arith.constant 0 : i32
    return %c0_i32, %c0_i32_0 : i32, i32
  }
  func.func @transform_5(%arg0: i32) -> (i32, i32, i32) {
    %c0_i32 = arith.constant 0 : i32
    %c0_i32_0 = arith.constant 0 : i32
    %c0_i32_1 = arith.constant 0 : i32
    %c0_i32_2 = arith.constant 0 : i32
    return %c0_i32, %c0_i32_0, %c0_i32_1 : i32, i32, i32
  }
  func.func @transform_6(%arg0: i32) -> (i32, i32) {
    %c0_i32 = arith.constant 0 : i32
    %c0_i32_0 = arith.constant 0 : i32
    %c0_i32_1 = arith.constant 0 : i32
    return %c0_i32, %c0_i32_0 : i32, i32
  }
  func.func @transform_7(%arg0: i32) -> (i32, i32, i32) {
    %c0_i32 = arith.constant 0 : i32
    %c0_i32_0 = arith.constant 0 : i32
    %c0_i32_1 = arith.constant 0 : i32
    %c0_i32_2 = arith.constant 0 : i32
    return %c0_i32, %c0_i32_0, %c0_i32_1 : i32, i32, i32
  }
  func.func @transform_8(%arg0: i32) -> (i32, i32) {
    %c0_i32 = arith.constant 0 : i32
    %c0_i32_0 = arith.constant 0 : i32
    %c0_i32_1 = arith.constant 0 : i32
    return %c0_i32, %c0_i32_0 : i32, i32
  }
  func.func @transform_9(%arg0: i32) -> (i32, i32, i32) {
    %c0_i32 = arith.constant 0 : i32
    %c0_i32_0 = arith.constant 0 : i32
    %c0_i32_1 = arith.constant 0 : i32
    return %arg0, %c0_i32, %c0_i32_0 : i32, i32, i32
  }
}

</mosaic_0001>

<bundles_post_ra>
// kernel: unet_up_forward.1
= control target key start
LH: loop header
LB: loop body
LE: loop exit
PB: predicated region body
PF: predicated region fallthrough
CT: control target
= control target key end

     0   :  { %v4807_v3 = vmov 0   ;;  %s3624_s17 = smov 1   ;;  %vm106_vm0 = vcmask 130048   ;;  %s3625_s19 = smov 16   ;;  %v65_v31 = vlaneseq  ;;  %vm2040_vm9 = vcmask 1043456   ;;  %s4797_s0 = inlined_call_operand.vmem [shape: bf16[1,16,512], index: 0, kind: input, shape index: {}]   ;;  %s4798_s2 = inlined_call_operand.vmem [shape: bf16[4,8,16], index: 2, kind: input, shape index: {}]   ;;  %s4799_s3 = inlined_call_operand.vmem [shape: f32[8,1], index: 3, kind: input, shape index: {}]   ;;  %s4800_s1 = inlined_call_operand.vmem [shape: bf16[1,8,512], index: 1, kind: input, shape index: {}]   ;;  %s4801_s4 = inlined_call_operand.vmem [shape: f32[15,512], index: 4, kind: input, shape index: {}]   ;;  %s4802_s6 = inlined_call_operand.vmem [shape: f32[8,1], index: 6, kind: input, shape index: {}]   ;;  %s4803_s5 = inlined_call_operand.vmem [shape: bf16[9,8,16], index: 5, kind: input, shape index: {}]   ;;  %s4804_s8 = inlined_call_operand.vmem [shape: f32[8,1], index: 8, kind: input, shape index: {}]   ;;  %s4805_s7 = inlined_call_operand.vmem [shape: bf16[9,8,8], index: 7, kind: input, shape index: {}]   ;;  %s4806_s9 = inlined_call_operand.vmem [shape: f32[1,8,512], index: 9, kind: output, shape index: {}]  }
   0x1   :  { %v42_v0 = vld [vmem:[%s4797_s0 + $0x8] sm:$0xff]  ;;  %v44_v1 = vld [vmem:[%s4797_s0 + $0x18] sm:$0xff]  ;;  %v41_v2 = vld [vmem:[%s4797_s0] sm:$0xff]  ;;  %142 = vmatprep.mubr.bf16.mxu0 %v4807_v3  ;;  %183 = vmatprep.mubr.bf16.mxu1 %v4807_v3  ;;  %s3626_s20 = smov 17   ;;  %s3630_s27 = smov 112   ;;  %vm2036_vm10 = vcmask 64512  }
   0x2   :  { %v47_v4 = vunpack.c.l.bf16 %v42_v0  ;;  %v51_v5 = vunpack.c.l.bf16 %v44_v1  ;;  %v43_v6 = vld [vmem:[%s4797_s0 + $0x10] sm:$0xff]  ;;  %v45_v7 = vunpack.c.l.bf16 %v41_v2  ;;  %v48_v8 = vunpack.c.h.bf16 %v42_v0  ;;  %3529 = vset.pattern.permute.xlu0 %v4807_v3  ;;  %3610 = vset.pattern.permute.xlu1 %v4807_v3  ;;  %v85_v21 = vld [vmem:[%s4798_s2] sm:$0xf]  ;;  %v54_v24 = vld [vmem:[%s4800_s1 + $0x8] sm:$0xff]  ;;  %s3631_s28 = smov 111  }
   0x3   :  { %v49_v9 = vunpack.c.l.bf16 %v43_v6  ;;  %v52_v10 = vunpack.c.h.bf16 %v44_v1  ;;  %v46_v11 = vunpack.c.h.bf16 %v41_v2  ;;  %v50_v12 = vunpack.c.h.bf16 %v43_v6  ;;  %v59_v22 = vld [vmem:[%s4799_s3] sm:$0xff]  ;;  %v3764_v38 = vld [vmem:[%s4801_s4 + $0x10] sm:$0xff]  ;;  %v3769_v39 = vld [vmem:[%s4801_s4 + $0x18] sm:$0xff]  ;;  %s3628_s3 = smov 127  }
   0x4   :  { %v3479_v13 = vpack.i.bf16 %v51_v5, %v47_v4  ;;  %v3214_v14 = vcombine.high %v42_v0, %v44_v1  ;;  %v3212_v18 = vcombine.high %v41_v2, %v43_v6  ;;  %v3211_v19 = vcombine.low %v41_v2, %v43_v6  ;;  %v53_v23 = vld [vmem:[%s4800_s1] sm:$0xff]  ;;  %v3774_v41 = vld [vmem:[%s4801_s4 + $0x8] sm:$0xff] }
   0x5   :  { %v3469_v15 = vpack.i.bf16 %v49_v9, %v45_v7  ;;  %v3484_v16 = vpack.i.bf16 %v52_v10, %v48_v8  ;;  %v3474_v17 = vpack.i.bf16 %v50_v12, %v46_v11  ;;  %v3213_v20 = vcombine.low %v42_v0, %v44_v1  ;;  %v3756_v35 = vld [vmem:[%s4801_s4] sm:$0xff] }
   0x6   :  { %3480 = vrot.lane.b32.xlu1 %v3479_v13, %s3624_s17  ;;  %151 = vmatprep.subr.bf16.mxu1 %v3214_v14  ;;  %v3726_v25 = vunpack.c.l.bf16 %v53_v23  ;;  %v3728_v26 = vunpack.c.h.bf16 %v53_v23  ;;  %v3730_v27 = vunpack.c.l.bf16 %v54_v24  ;;  %v3732_v28 = vunpack.c.h.bf16 %v54_v24 }
   0x7   :  { %3470 = vrot.lane.b32.xlu0 %v3469_v15, %s3624_s17  ;;  %110 = vmatprep.subr.bf16.mxu0 %v3212_v18  ;;  %v3746_v32 = vshrl.u32 %v65_v31, 7  ;;  %v3748_v33 = vand.u32 127, %v65_v31 }
   0x8   :  { %111 = vmatpush1.bf16.msra.mxu0 %v3211_v19  ;;  %152 = vmatpush1.bf16.msra.mxu1 %v3213_v20  ;;  %v3736_v29 = vpack.i.bf16 %v3728_v26, %v3726_v25  ;;  %v3742_v30 = vpack.i.bf16 %v3730_v27, %v3732_v28 }
   0x9   :  { %v3751_v34 = vsub.s32 1, %v3746_v32  ;;  %v3759_v36 = vsub.s32 2, %v3746_v32  ;;  %vm214_vm1 = vcmp.lt.s32.totalorder %v3748_v33, 1  ;;  %vm358_vm2 = vcmp.lt.s32.totalorder %v3748_v33, 16 }
   0xa   :  { %3485 = vrot.lane.b32.xlu1 %v3484_v16, %s3624_s17  ;;  %v3799_v60 = vsub.s32 3, %v3746_v32  ;;  %vm502_vm3 = vcmp.lt.s32.totalorder %v3748_v33, 17  ;;  %vm938_vm4 = vcmp.lt.s32.totalorder %v3748_v33, 15  ;;  %vm1320_vm5 = vcmp.lt.s32.totalorder %v3748_v33, 127 }
   0xb   :  { %3475 = vrot.lane.b32.xlu0 %v3474_v17, %s3624_s17  ;;  %3215 = vmatmul.mubr.msk.bf16.vlgmr.msra.gmra.mrb[0].mxu0 %vm106_vm0, %v85_v21  ;;  %v226_v42 = vrot.slane %v3756_v35, %v3751_v34  ;;  %v234_v43 = vrot.slane %v3764_v38, %v3751_v34  ;;  %v238_v44 = vrot.slane %v3769_v39, %v3751_v34  ;;  %vm1464_vm6 = vcmp.lt.s32.totalorder %v3748_v33, 113 }
   0xc   :  { %3216 = vmatmul.mubr.msk.bf16.vlgmr.msra.gmra.mrb[0].mxu1 %vm106_vm0, %v85_v21  ;;  %288 = vmatprep.mubr.bf16.mxu0 %v4807_v3  ;;  %v370_v45 = vrot.slane %v3756_v35, %v3759_v36  ;;  %v3788_v46 = vrot.slane %v3764_v38, %v3759_v36  ;;  %v230_v50 = vrot.slane %v3774_v41, %v3751_v34  ;;  %vm1608_vm7 = vcmp.lt.s32.totalorder %v3748_v33, 112 }
   0xd   :  { %329 = vmatprep.mubr.bf16.mxu1 %v4807_v3  ;;  %v3794_v51 = vrot.slane %v3769_v39, %v3759_v36  ;;  %v374_v59 = vrot.slane %v3774_v41, %v3759_v36  ;;  %v3820_v19 = vrot.slane %v3756_v35, %v3799_v60  ;;  %vm1752_vm8 = vcmp.lt.s32.totalorder %v3748_v33, 111  ;;  %v3286_v33 = vld [vmem:[%s4805_s7 + $0x1c] sm:$0xf] }
   0xe   :  { %3495 = vrot.lane.b32.xlu1 %v3474_v17, %s3625_s19 }
   0xf   :  { %3490 = vrot.lane.b32.xlu0 %v3469_v15, %s3625_s19 }
  0x12   :  { %3505 = vrot.lane.b32.xlu1 %v3484_v16, %s3625_s19 }
  0x13   :  { %3500 = vrot.lane.b32.xlu0 %v3479_v13, %s3625_s19 }
  0x16   :  { %3515 = vrot.lane.b32.xlu1 %v3474_v17, %s3626_s20 }
  0x17   :  { %3510 = vrot.lane.b32.xlu0 %v3469_v15, %s3626_s20 }
  0x1a   :  { %3525 = vrot.lane.b32.xlu1 %v3484_v16, %s3626_s20 }
  0x1b   :  { %3520 = vrot.lane.b32.xlu0 %v3479_v13, %s3626_s20 }
  0x1e   :  { %3531 = vrot.lane.b32.xlu1 %v3736_v29, %s3626_s20 }
  0x1f   :  { %62 = vperm.xlu0 %3529, %v59_v22  }
  0x22   :  { %3536 = vrot.lane.b32.xlu1 %v3742_v30, %s3626_s20 }
  0x78   :  { %v3481_v37 = vpop.permute.xlu1 %3480 }
  0x79   :  { %v3471_v40 = vpop.permute.xlu0 %3470  ;;  %v3483_v47 = vunpack.i.h.bf16 %v3481_v37  ;;  %v3482_v48 = vunpack.i.l.bf16 %v3481_v37 }
  0x7a   :  { %v3473_v52 = vunpack.i.h.bf16 %v3471_v40  ;;  %v3472_v53 = vunpack.i.l.bf16 %v3471_v40 }
  0x7c   :  { %v3486_v49 = vpop.permute.xlu1 %3485 }
  0x7d   :  { %v3488_v54 = vunpack.i.h.bf16 %v3486_v49  ;;  %v3487_v55 = vunpack.i.l.bf16 %v3486_v49  ;;  %v3476_v56 = vpop.permute.xlu0 %3475  ;;  %v518_v49 = vrot.slane %v3774_v41, %v3799_v60 }
  0x7e   :  { %v3478_v57 = vunpack.i.h.bf16 %v3476_v56  ;;  %v3477_v58 = vunpack.i.l.bf16 %v3476_v56 }
  0x7f   :  { %v221_v61 = vsel %vm214_vm1, %v3487_v55, %v3472_v53  ;;  %v222_v62 = vsel %vm214_vm1, %v3488_v54, %v3473_v52  ;;  %v215_v63 = vsel %vm214_vm1, %v3482_v48, %v3487_v55  ;;  %v216_v0 = vsel %vm214_vm1, %v3483_v47, %v3488_v54 }
  0x80   :  { %v239_v1 = vmul.f32 %v226_v42, %v221_v61  ;;  %v243_v2 = vmul.f32 %v226_v42, %v222_v62  ;;  %v218_v4 = vsel %vm214_vm1, %v3478_v57, %v3483_v47  ;;  %v217_v5 = vsel %vm214_vm1, %v3477_v58, %v3482_v48  ;;  %v3496_v6 = vpop.permute.xlu1 %3495 }
  0x81   :  { %v245_v7 = vmul.f32 %v234_v43, %v218_v4  ;;  %v241_v8 = vmul.f32 %v234_v43, %v217_v5  ;;  %v3498_v9 = vunpack.i.h.bf16 %v3496_v6  ;;  %v3497_v10 = vunpack.i.l.bf16 %v3496_v6  ;;  %v3491_v11 = vpop.permute.xlu0 %3490 }
  0x82   :  { %v3493_v12 = vunpack.i.h.bf16 %v3491_v11  ;;  %v3492_v13 = vunpack.i.l.bf16 %v3491_v11  ;;  %v242_v14 = vmul.f32 %v238_v44, %v215_v63  ;;  %v246_v15 = vmul.f32 %v238_v44, %v216_v0 }
  0x83   :  { %v219_v16 = vsel %vm214_vm1, %v3472_v53, %v3477_v58  ;;  %v220_v17 = vsel %vm214_vm1, %v3473_v52, %v3478_v57  ;;  %v251_v18 = vpack.c.bf16 %v245_v7, %v241_v8  ;;  %v249_v42 = vpack.c.bf16 %v243_v2, %v239_v1  ;;  %v3217_v53 = vld [vmem:[%s4798_s2 + $0x4] sm:$0xf] }
  0x84   :  { %v252_v20 = vpack.c.bf16 %v246_v15, %v242_v14  ;;  %v3506_v21 = vpop.permute.xlu1 %3505  ;;  %v240_v22 = vmul.f32 %v230_v50, %v219_v16  ;;  %v244_v23 = vmul.f32 %v230_v50, %v220_v17  ;;  %v363_v24 = vsel %vm358_vm2, %v3492_v13, %v3497_v10 }
  0x85   :  { %v3508_v31 = vunpack.i.h.bf16 %v3506_v21  ;;  %v3507_v37 = vunpack.i.l.bf16 %v3506_v21  ;;  %v3501_v40 = vpop.permute.xlu0 %3500  ;;  %v364_v43 = vsel %vm358_vm2, %v3493_v12, %v3498_v9  ;;  %v384_v54 = vmul.f32 %v374_v59, %v363_v24 }
  0x86   :  { %297 = vmatprep.subr.bf16.mxu1 %v252_v20  ;;  %v3503_v44 = vunpack.i.h.bf16 %v3501_v40  ;;  %v3502_v47 = vunpack.i.l.bf16 %v3501_v40  ;;  %v250_v48 = vpack.c.bf16 %v244_v23, %v240_v22  ;;  %v388_v55 = vmul.f32 %v374_v59, %v364_v43 }
  0x87   :  { %v365_v50 = vsel %vm358_vm2, %v3507_v37, %v3492_v13  ;;  %v366_v52 = vsel %vm358_vm2, %v3508_v31, %v3493_v12  ;;  %298 = vmatpush1.bf16.msra.mxu1 %v251_v18  ;;  %v522_v14 = vrot.slane %v3764_v38, %v3799_v60  ;;  %v526_v18 = vrot.slane %v3769_v39, %v3799_v60 }
  0x88   :  { %v383_v56 = vmul.f32 %v370_v45, %v365_v50  ;;  %v387_v57 = vmul.f32 %v370_v45, %v366_v52  ;;  %v360_v58 = vsel %vm358_vm2, %v3503_v44, %v3508_v31  ;;  %v362_v61 = vsel %vm358_vm2, %v3498_v9, %v3503_v44  ;;  %256 = vmatprep.subr.bf16.mxu0 %v250_v48  ;;  %v3516_v62 = vpop.permute.xlu1 %3515 }
  0x89   :  { %v389_v63 = vmul.f32 %v3788_v46, %v362_v61  ;;  %v359_v0 = vsel %vm358_vm2, %v3502_v47, %v3507_v37  ;;  %v361_v1 = vsel %vm358_vm2, %v3497_v10, %v3502_v47  ;;  %257 = vmatpush1.bf16.msra.mxu0 %v249_v42  ;;  %v3518_v59 = vunpack.i.h.bf16 %v3516_v62  ;;  %v3511_v2 = vpop.permute.xlu0 %3510 }
  0x8a   :  { %v385_v45 = vmul.f32 %v3788_v46, %v361_v1  ;;  %3219 = vmatmul.mubr.msk.bf16.vlgmr.msra.gmra.mrb[0].mxu1 %vm106_vm0, %v3217_v53  ;;  %v3517_v4 = vunpack.i.l.bf16 %v3516_v62  ;;  %v3513_v5 = vunpack.i.h.bf16 %v3511_v2  ;;  %v3512_v6 = vunpack.i.l.bf16 %v3511_v2 }
  0x8b   :  { %v386_v7 = vmul.f32 %v3794_v51, %v359_v0  ;;  %v390_v8 = vmul.f32 %v3794_v51, %v360_v58  ;;  %v394_v9 = vpack.c.bf16 %v388_v55, %v384_v54  ;;  %v393_v11 = vpack.c.bf16 %v387_v57, %v383_v56  ;;  %473 = vmatprep.mubr.bf16.mxu1 %v4807_v3  ;;  %v3223_v57 = vld [vmem:[%s4798_s2 + $0xc] sm:$0xf] }
  0x8c   :  { %3218 = vmatmul.mubr.msk.bf16.vlgmr.msra.gmra.mrb[0].mxu0 %vm106_vm0, %v3217_v53  ;;  %v508_v10 = vsel %vm502_vm3, %v3513_v5, %v3518_v59  ;;  %v507_v46 = vsel %vm502_vm3, %v3512_v6, %v3517_v4  ;;  %v395_v12 = vpack.c.bf16 %v389_v63, %v385_v45  ;;  %v3526_v13 = vpop.permute.xlu1 %3525  ;;  %v67_v58 = vsub.s32 0, %v3746_v32 }
  0x8d   :  { %v396_v15 = vpack.c.bf16 %v390_v8, %v386_v7  ;;  %400 = vmatprep.subr.bf16.mxu0 %v394_v9  ;;  %v3528_v51 = vunpack.i.h.bf16 %v3526_v13  ;;  %v3527_v16 = vunpack.i.l.bf16 %v3526_v13  ;;  %v3521_v17 = vpop.permute.xlu0 %3520  ;;  %432 = vmatprep.mubr.bf16.mxu0 %v4807_v3  ;;  %v528_v22 = vmul.f32 %v518_v49, %v507_v46 }
  0x8e   :  { %v3523_v20 = vunpack.i.h.bf16 %v3521_v17  ;;  %v3522_v21 = vunpack.i.l.bf16 %v3521_v17  ;;  %401 = vmatpush1.bf16.msra.mxu0 %v393_v11  ;;  %v532_v23 = vmul.f32 %v518_v49, %v508_v10  ;;  %v68_v61 = vrot.slane %v3756_v35, %v67_v58  ;;  %v3945_v17 = vld [vmem:[%s4801_s4 + $0x28] sm:$0x7f] }
  0x8f   :  { %441 = vmatprep.subr.bf16.mxu1 %v396_v15  ;;  %v509_v24 = vsel %vm502_vm3, %v3527_v16, %v3512_v6  ;;  %v510_v31 = vsel %vm502_vm3, %v3528_v51, %v3513_v5  ;;  %v72_v63 = vrot.slane %v3774_v41, %v67_v58  ;;  %v76_v1 = vrot.slane %v3764_v38, %v67_v58 }
  0x90   :  { %442 = vmatpush1.bf16.msra.mxu1 %v395_v12  ;;  %v527_v37 = vmul.f32 %v3820_v19, %v509_v24  ;;  %v531_v40 = vmul.f32 %v3820_v19, %v510_v31  ;;  %v504_v42 = vsel %vm502_vm3, %v3523_v20, %v3528_v51  ;;  %v506_v43 = vsel %vm502_vm3, %v3518_v59, %v3523_v20  ;;  %v3220_v19 = vld [vmem:[%s4798_s2 + $0x8] sm:$0xf]  ;;  %s3627_s2 = smov 15   ;;  %v3983_v24 = vld [vmem:[%s4801_s4 + $0x20] sm:$0x7f] }
  0x91   :  { %v533_v44 = vmul.f32 %v522_v14, %v506_v43  ;;  %v503_v47 = vsel %vm502_vm3, %v3522_v21, %v3527_v16  ;;  %v505_v48 = vsel %vm502_vm3, %v3517_v4, %v3522_v21  ;;  %v534_v49 = vmul.f32 %v526_v18, %v504_v42  ;;  %v3988_v31 = vld [vmem:[%s4801_s4 + $0x38] sm:$0x7f] }
  0x92   :  { %v529_v50 = vmul.f32 %v522_v14, %v505_v48  ;;  %v530_v52 = vmul.f32 %v526_v18, %v503_v47  ;;  %v538_v53 = vpack.c.bf16 %v532_v23, %v528_v22  ;;  %v537_v56 = vpack.c.bf16 %v531_v40, %v527_v37  ;;  %v3532_v47 = vpop.permute.xlu1 %3531 }
  0x93   :  { %v80_v45 = vrot.slane %v3769_v39, %v67_v58  ;;  %v3937_v51 = vsub.s32 5, %v3746_v32  ;;  %v3940_v16 = vsub.s32 6, %v3746_v32  ;;  %v3570_v23 = vpack.i.bf16 %v3730_v27, %v3728_v26 }
  0x94   :  { %v540_v54 = vpack.c.bf16 %v534_v49, %v530_v52  ;;  %544 = vmatprep.subr.bf16.mxu0 %v538_v53  ;;  %v539_v55 = vpack.c.bf16 %v533_v44, %v529_v50  ;;  %v630_v44 = vld [vmem:[%s4802_s6] sm:$0xff]  ;;  %v4050_v49 = vsub.s32 4, %v3746_v32  ;;  %v3534_v50 = vunpack.i.h.bf16 %v3532_v47 }
  0x95   :  { %v3949_v18 = vrot.slane %v3945_v17, %v3937_v51  ;;  %v3953_v20 = vrot.slane %v3945_v17, %v3940_v16  ;;  %v3992_v37 = vrot.slane %v3983_v24, %v3937_v51  ;;  %v3996_v40 = vrot.slane %v3988_v31, %v3937_v51 }
  0x96   :  { %3222 = vmatmul.mubr.msk.bf16.vlgmr.msra.gmra.mrb[0].mxu1 %vm106_vm0, %v3220_v19  ;;  %585 = vmatprep.subr.bf16.mxu1 %v540_v54  ;;  %v4000_v42 = vrot.slane %v3983_v24, %v3940_v16  ;;  %v4004_v43 = vrot.slane %v3988_v31, %v3940_v16  ;;  %v3537_v48 = vpop.permute.xlu1 %3536  ;;  %v3533_v52 = vunpack.i.l.bf16 %v3532_v47  ;;  %v4054_v53 = vrot.slane %v3774_v41, %v4050_v49 }
  0x97   :  { %586 = vmatpush1.bf16.msra.mxu1 %v539_v55  ;;  %617 = vmatprep.mubr.bf16.mxu1 %v4807_v3  ;;  %v3538_v54 = vunpack.i.l.bf16 %v3537_v48 }
  0x98   :  { %3221 = vmatmul.mubr.msk.bf16.vlgmr.msra.gmra.mrb[0].mxu0 %vm106_vm0, %v3220_v19  ;;  %v657_v19 = vsel %vm502_vm3, %v3533_v52, %v3534_v50 }
  0x99   :  { %545 = vmatpush1.bf16.msra.mxu0 %v537_v56  ;;  %576 = vmatprep.mubr.bf16.mxu0 %v4807_v3  ;;  %v3539_v56 = vunpack.i.h.bf16 %v3537_v48 }
  0x9e   :  { %v63_v62 = vpop.permute.xlu0 %62 }
  0x9f   :  { %v81_v0 = vmul.f32 %v68_v61, %v63_v62  ;;  %v82_v2 = vmul.f32 %v72_v63, %v63_v62  ;;  %v83_v8 = vmul.f32 %v76_v1, %v63_v62  ;;  %v84_v46 = vmul.f32 %v80_v45, %v63_v62 }
  0xa0   :  { %v4063_v62 = vrot.slane %v3756_v35, %v4050_v49  ;;  %v4067_v63 = vrot.slane %v3769_v39, %v4050_v49  ;;  %v653_v1 = vsel %vm502_vm3, %v3539_v56, %v3538_v54 }
  0xa2   :  { %3225 = vmatmul.mubr.msk.bf16.vlgmr.msra.gmra.mrb[0].mxu1 %vm106_vm0, %v3223_v57 }
  0xa3   :  { %766 = vmatprep.mubr.bf16.mxu1 %v4807_v3 }
  0xa4   :  { %3224 = vmatmul.mubr.msk.bf16.vlgmr.msra.gmra.mrb[0].mxu0 %vm106_vm0, %v3223_v57 }
  0xa5   :  { %725 = vmatprep.mubr.bf16.mxu0 %v4807_v3 }
 0x175   :  { %v619_v59 = vpop.f32.mrb[0].mxu1 }
 0x176   :  { %v621_v4 = vpop.f32.mrb[1].mxu1  ;;  %v3900_v14 = vadd.f32 %v619_v59, %v83_v8  ;;  %v659_v59 = vsel %vm502_vm3, %v3538_v54, %v3533_v52 }
 0x177   :  { %v578_v5 = vpop.f32.mrb[0].mxu0  ;;  %v623_v6 = vpop.f32.mrb[2].mxu1  ;;  %v3902_v15 = vadd.f32 %v621_v4, %v84_v46  ;;  %v655_v4 = vsel %vm502_vm3, %v3534_v50, %v3539_v56 }
 0x178   :  { %v3892_v7 = vadd.f32 %v578_v5, %v81_v0  ;;  %v580_v9 = vpop.f32.mrb[1].mxu0  ;;  %v624_v11 = vpop.f32.mrb[3].mxu1  ;;  %v678_v0 = vmul.f32 %v4054_v53, %v657_v19 }
 0x179   :  { %v3894_v10 = vadd.f32 %v580_v9, %v82_v2  ;;  %v582_v12 = vpop.f32.mrb[2].mxu0  ;;  %v4076_v2 = vrot.slane %v3764_v38, %v4050_v49 }
 0x17a   :  { %639 = vrot.lane.b32.xlu1 %v3892_v7, %s3626_s20  ;;  %v583_v13 = vpop.f32.mrb[3].mxu0  ;;  %v677_v12 = vmul.f32 %v4063_v62, %v659_v59 }
 0x17b   :  { %643 = vrot.lane.b32.xlu0 %v3894_v10, %s3626_s20 }
 0x17e   :  { %647 = vrot.lane.b32.xlu1 %v3900_v14, %s3626_s20 }
 0x17f   :  { %651 = vrot.lane.b32.xlu0 %v3902_v15, %s3626_s20 }
 0x182   :  { %781 = vrot.lane.b32.xlu1 %v3892_v7, %s3625_s19 }
 0x183   :  { %3541 = vrot.lane.b32.xlu0 %v3736_v29, %s3625_s19 }
 0x186   :  { %3546 = vrot.lane.b32.xlu1 %v3742_v30, %s3625_s19 }
 0x187   :  { %785 = vrot.lane.b32.xlu0 %v3894_v10, %s3625_s19 }
 0x18a   :  { %789 = vrot.lane.b32.xlu1 %v3900_v14, %s3625_s19 }
 0x18b   :  { %793 = vrot.lane.b32.xlu0 %v3902_v15, %s3625_s19 }
 0x18e   :  { %924 = vrot.lane.b32.xlu1 %v3892_v7, %s3627_s2 }
 0x18f   :  { %3551 = vrot.lane.b32.xlu0 %v3736_v29, %s3627_s2 }
 0x192   :  { %3556 = vrot.lane.b32.xlu1 %v3742_v30, %s3627_s2 }
 0x193   :  { %928 = vrot.lane.b32.xlu0 %v3894_v10, %s3627_s2 }
 0x196   :  { %932 = vrot.lane.b32.xlu1 %v3900_v14, %s3627_s2 }
 0x197   :  { %936 = vrot.lane.b32.xlu0 %v3902_v15, %s3627_s2 }
 0x19a   :  { %1068 = vrot.lane.b32.xlu1 %v3892_v7, %s3624_s17 }
 0x19b   :  { %3561 = vrot.lane.b32.xlu0 %v3736_v29, %s3624_s17  ;;  %v3962_v29 = vld [vmem:[%s4801_s4 + $0x30] sm:$0x7f]  ;;  %s3629_s4 = smov 113  }
 0x19c   :  { %v3966_v21 = vrot.slane %v3962_v29, %v3937_v51  ;;  %v3970_v22 = vrot.slane %v3962_v29, %v3940_v16 }
 0x19e   :  { %3566 = vrot.lane.b32.xlu1 %v3742_v30, %s3624_s17  ;;  %v3575_v30 = vpack.i.bf16 %v3732_v28, %v3726_v25 }
 0x19f   :  { %1072 = vrot.lane.b32.xlu0 %v3894_v10, %s3624_s17 }
 0x1a2   :  { %1076 = vrot.lane.b32.xlu1 %v3900_v14, %s3624_s17 }
 0x1a3   :  { %1080 = vrot.lane.b32.xlu0 %v3902_v15, %s3624_s17 }
 0x1a6   :  { %3576 = vrot.lane.b32.xlu1 %v3575_v30, %s3628_s3 }
 0x1a7   :  { %3571 = vrot.lane.b32.xlu0 %v3570_v23, %s3628_s3 }
 0x1aa   :  { %1310 = vrot.lane.b32.xlu1 %v3894_v10, %s3628_s3 }
 0x1ab   :  { %1314 = vrot.lane.b32.xlu0 %v3900_v14, %s3628_s3 }
 0x1ae   :  { %1318 = vrot.lane.b32.xlu1 %v3902_v15, %s3628_s3 }
 0x1af   :  { %1306 = vrot.lane.b32.xlu0 %v3892_v7, %s3628_s3 }
 0x1b2   :  { %3586 = vrot.lane.b32.xlu1 %v3575_v30, %s3629_s4 }
 0x1b3   :  { %3581 = vrot.lane.b32.xlu0 %v3570_v23, %s3629_s4 }
 0x1b6   :  { %1454 = vrot.lane.b32.xlu1 %v3894_v10, %s3629_s4 }
 0x1b7   :  { %1458 = vrot.lane.b32.xlu0 %v3900_v14, %s3629_s4 }
 0x1ba   :  { %1462 = vrot.lane.b32.xlu1 %v3902_v15, %s3629_s4 }
 0x1bb   :  { %1450 = vrot.lane.b32.xlu0 %v3892_v7, %s3629_s4 }
 0x1be   :  { %3596 = vrot.lane.b32.xlu1 %v3575_v30, %s3630_s27 }
 0x1bf   :  { %3591 = vrot.lane.b32.xlu0 %v3570_v23, %s3630_s27 }
 0x1c2   :  { %1598 = vrot.lane.b32.xlu1 %v3894_v10, %s3630_s27 }
 0x1c3   :  { %1602 = vrot.lane.b32.xlu0 %v3900_v14, %s3630_s27 }
 0x1c6   :  { %1606 = vrot.lane.b32.xlu1 %v3902_v15, %s3630_s27 }
 0x1c7   :  { %1594 = vrot.lane.b32.xlu0 %v3892_v7, %s3630_s27 }
 0x1ca   :  { %3606 = vrot.lane.b32.xlu1 %v3575_v30, %s3631_s28 }
 0x1cb   :  { %3601 = vrot.lane.b32.xlu0 %v3570_v23, %s3631_s28  ;;  %v680_v23 = vmul.f32 %v4067_v63, %v653_v1 }
 0x1ce   :  { %1742 = vrot.lane.b32.xlu1 %v3894_v10, %s3631_s28 }
 0x1cf   :  { %1746 = vrot.lane.b32.xlu0 %v3900_v14, %s3631_s28 }
 0x1d2   :  { %1750 = vrot.lane.b32.xlu1 %v3902_v15, %s3631_s28 }
 0x1d3   :  { %1738 = vrot.lane.b32.xlu0 %v3892_v7, %s3631_s28 }
 0x1d7   :  { %633 = vperm.xlu0 %3529, %v630_v44   ;;  %v679_v44 = vmul.f32 %v4076_v2, %v655_v4 }
 0x1ec   :  { %v640_v55 = vpop.permute.xlu1 %639 }
 0x1ed   :  { %v644_v57 = vpop.permute.xlu0 %643 }
 0x1ee   :  { %v658_v58 = vsel %vm502_vm3, %v640_v55, %v644_v57 }
 0x1ef   :  { %v682_v61 = vmul.f32 %v4054_v53, %v658_v58 }
 0x1f0   :  { %v648_v45 = vpop.permute.xlu1 %647 }
 0x1f1   :  { %v656_v5 = vsel %vm502_vm3, %v644_v57, %v648_v45  ;;  %v652_v6 = vpop.permute.xlu0 %651  ;;  %v687_v8 = vpack.c.bf16 %v682_v61, %v678_v0  ;;  %v685_v57 = vld [vmem:[%s4803_s5] sm:$0xf] }
 0x1f2   :  { %v683_v9 = vmul.f32 %v4076_v2, %v656_v5  ;;  %v654_v11 = vsel %vm502_vm3, %v648_v45, %v652_v6  ;;  %v660_v46 = vsel %vm502_vm3, %v652_v6, %v640_v55  ;;  %v4094_v55 = vrot.slane %v3774_v41, %v3937_v51 }
 0x1f3   :  { %v681_v13 = vmul.f32 %v4063_v62, %v660_v46  ;;  %v684_v30 = vmul.f32 %v4067_v63, %v654_v11  ;;  %693 = vmatprep.subr.bf16.mxu0 %v687_v8  ;;  %v4103_v45 = vrot.slane %v3769_v39, %v3937_v51  ;;  %v4114_v8 = vrot.slane %v3756_v35, %v3937_v51 }
 0x1f4   :  { %v782_v47 = vpop.permute.xlu1 %781  ;;  %v688_v19 = vpack.c.bf16 %v683_v9, %v679_v44  ;;  %v4121_v46 = vrot.slane %v3764_v38, %v3937_v51 }
 0x1f5   :  { %v686_v48 = vpack.c.bf16 %v681_v13, %v677_v12  ;;  %v3542_v50 = vpop.permute.xlu0 %3541  ;;  %v689_v52 = vpack.c.bf16 %v684_v30, %v680_v23 }
 0x1f6   :  { %v3544_v54 = vunpack.i.h.bf16 %v3542_v50  ;;  %v3543_v56 = vunpack.i.l.bf16 %v3542_v50 }
 0x1f7   :  { %694 = vmatpush1.bf16.msra.mxu0 %v686_v48  ;;  %734 = vmatprep.subr.bf16.mxu1 %v689_v52 }
 0x1f8   :  { %v799_v58 = vsel %vm358_vm2, %v3543_v56, %v3544_v54  ;;  %v3547_v61 = vpop.permute.xlu1 %3546  ;;  %735 = vmatpush1.bf16.msra.mxu1 %v688_v19 }
 0x1f9   :  { %v3549_v0 = vunpack.i.h.bf16 %v3547_v61  ;;  %v3548_v1 = vunpack.i.l.bf16 %v3547_v61  ;;  %v786_v59 = vpop.permute.xlu0 %785  ;;  %v820_v9 = vmul.f32 %v4094_v55, %v799_v58 }
 0x1fa   :  { %v800_v4 = vsel %vm358_vm2, %v782_v47, %v786_v59  ;;  %3226 = vmatmul.mubr.msk.bf16.vlgmr.msra.gmra.mrb[4].mxu0 %vm106_vm0, %v685_v57 }
 0x1fb   :  { %v795_v5 = vsel %vm358_vm2, %v3549_v0, %v3548_v1  ;;  %v824_v6 = vmul.f32 %v4094_v55, %v800_v4  ;;  %3227 = vmatmul.mubr.msk.bf16.vlgmr.msra.gmra.mrb[4].mxu1 %vm106_vm0, %v685_v57  ;;  %v801_v11 = vsel %vm358_vm2, %v3548_v1, %v3543_v56  ;;  %868 = vmatprep.mubr.bf16.mxu0 %v4807_v3 }
 0x1fc   :  { %v790_v12 = vpop.permute.xlu1 %789  ;;  %909 = vmatprep.mubr.bf16.mxu1 %v4807_v3  ;;  %v797_v13 = vsel %vm358_vm2, %v3544_v54, %v3549_v0  ;;  %v822_v48 = vmul.f32 %v4103_v45, %v795_v5  ;;  %v819_v19 = vmul.f32 %v4114_v8, %v801_v11 }
 0x1fd   :  { %v798_v30 = vsel %vm358_vm2, %v786_v59, %v790_v12  ;;  %v794_v23 = vpop.permute.xlu0 %793  ;;  %v830_v44 = vpack.c.bf16 %v824_v6, %v820_v9  ;;  %v821_v57 = vmul.f32 %v4121_v46, %v797_v13  ;;  %v3228_v6 = vld [vmem:[%s4803_s5 + $0x4] sm:$0xf] }
 0x1fe   :  { %v825_v50 = vmul.f32 %v4121_v46, %v798_v30  ;;  %v796_v51 = vsel %vm358_vm2, %v790_v12, %v794_v23  ;;  %v802_v52 = vsel %vm358_vm2, %v794_v23, %v782_v47  ;;  %v4142_v47 = vrot.slane %v3774_v41, %v3940_v16 }
 0x1ff   :  { %v823_v56 = vmul.f32 %v4114_v8, %v802_v52  ;;  %v826_v54 = vmul.f32 %v4103_v45, %v796_v51  ;;  %836 = vmatprep.subr.bf16.mxu0 %v830_v44  ;;  %v4151_v23 = vrot.slane %v3769_v39, %v3940_v16  ;;  %v4162_v51 = vrot.slane %v3756_v35, %v3940_v16 }
 0x200   :  { %v925_v58 = vpop.permute.xlu1 %924  ;;  %v831_v59 = vpack.c.bf16 %v825_v50, %v821_v57 }
 0x201   :  { %v829_v61 = vpack.c.bf16 %v823_v56, %v819_v19  ;;  %v3552_v0 = vpop.permute.xlu0 %3551  ;;  %v832_v1 = vpack.c.bf16 %v826_v54, %v822_v48  ;;  %v4169_v56 = vrot.slane %v3764_v38, %v3940_v16 }
 0x202   :  { %v3554_v4 = vunpack.i.h.bf16 %v3552_v0  ;;  %v3553_v5 = vunpack.i.l.bf16 %v3552_v0 }
 0x203   :  { %837 = vmatpush1.bf16.msra.mxu0 %v829_v61  ;;  %877 = vmatprep.subr.bf16.mxu1 %v832_v1 }
 0x204   :  { %v943_v9 = vsel %vm938_vm4, %v3553_v5, %v3554_v4  ;;  %v3557_v11 = vpop.permute.xlu1 %3556  ;;  %878 = vmatpush1.bf16.msra.mxu1 %v831_v59 }
 0x205   :  { %v3559_v12 = vunpack.i.h.bf16 %v3557_v11  ;;  %v3558_v13 = vunpack.i.l.bf16 %v3557_v11  ;;  %v929_v30 = vpop.permute.xlu0 %928  ;;  %v964_v52 = vmul.f32 %v4142_v47, %v943_v9 }
 0x206   :  { %v944_v44 = vsel %vm938_vm4, %v925_v58, %v929_v30  ;;  %3229 = vmatmul.mubr.msk.bf16.vlgmr.msra.gmra.mrb[4].mxu0 %vm106_vm0, %v3228_v6 }
 0x207   :  { %v939_v48 = vsel %vm938_vm4, %v3559_v12, %v3558_v13  ;;  %v968_v50 = vmul.f32 %v4142_v47, %v944_v44  ;;  %3230 = vmatmul.mubr.msk.bf16.vlgmr.msra.gmra.mrb[4].mxu1 %vm106_vm0, %v3228_v6  ;;  %v945_v19 = vsel %vm938_vm4, %v3558_v13, %v3553_v5  ;;  %1012 = vmatprep.mubr.bf16.mxu0 %v4807_v3 }
 0x208   :  { %v933_v54 = vpop.permute.xlu1 %932  ;;  %1053 = vmatprep.mubr.bf16.mxu1 %v4807_v3  ;;  %v941_v57 = vsel %vm938_vm4, %v3554_v4, %v3559_v12  ;;  %v966_v59 = vmul.f32 %v4151_v23, %v939_v48  ;;  %v963_v9 = vmul.f32 %v4162_v51, %v945_v19  ;;  %v1092_v12 = vsub.s32 7, %v3746_v32  ;;  %v3231_v19 = vld [vmem:[%s4803_s5 + $0x8] sm:$0xf] }
 0x209   :  { %v942_v61 = vsel %vm938_vm4, %v929_v30, %v933_v54  ;;  %v937_v0 = vpop.permute.xlu0 %936  ;;  %v974_v1 = vpack.c.bf16 %v968_v50, %v964_v52  ;;  %v965_v13 = vmul.f32 %v4169_v56, %v941_v57 }
 0x20a   :  { %v969_v5 = vmul.f32 %v4169_v56, %v942_v61  ;;  %v940_v16 = vsel %vm938_vm4, %v933_v54, %v937_v0  ;;  %v946_v6 = vsel %vm938_vm4, %v937_v0, %v925_v58  ;;  %v4189_v58 = vrot.slane %v3774_v41, %v1092_v12 }
 0x20b   :  { %v967_v11 = vmul.f32 %v4162_v51, %v946_v6  ;;  %v970_v4 = vmul.f32 %v4151_v23, %v940_v16  ;;  %980 = vmatprep.subr.bf16.mxu0 %v974_v1  ;;  %v4203_v41 = vrot.slane %v3764_v38, %v1092_v12 }
 0x20c   :  { %v1069_v30 = vpop.permute.xlu1 %1068  ;;  %v975_v52 = vpack.c.bf16 %v969_v5, %v965_v13  ;;  %v4197_v5 = vrot.slane %v3769_v39, %v1092_v12 }
 0x20d   :  { %v973_v44 = vpack.c.bf16 %v967_v11, %v963_v9  ;;  %v3562_v48 = vpop.permute.xlu0 %3561  ;;  %v976_v50 = vpack.c.bf16 %v970_v4, %v966_v59  ;;  %v4210_v11 = vrot.slane %v3756_v35, %v1092_v12 }
 0x20e   :  { %v3564_v54 = vunpack.i.h.bf16 %v3562_v48  ;;  %v3563_v61 = vunpack.i.l.bf16 %v3562_v48 }
 0x20f   :  { %981 = vmatpush1.bf16.msra.mxu0 %v973_v44  ;;  %1021 = vmatprep.subr.bf16.mxu1 %v976_v50 }
 0x210   :  { %v1086_v32 = vsel %vm214_vm1, %v3563_v61, %v3564_v54  ;;  %v3567_v57 = vpop.permute.xlu1 %3566  ;;  %1022 = vmatpush1.bf16.msra.mxu1 %v975_v52 }
 0x211   :  { %v3569_v0 = vunpack.i.h.bf16 %v3567_v57  ;;  %v3568_v1 = vunpack.i.l.bf16 %v3567_v57  ;;  %v1073_v59 = vpop.permute.xlu0 %1072  ;;  %v1107_v39 = vmul.f32 %v4189_v58, %v1086_v32 }
 0x212   :  { %v1087_v16 = vsel %vm214_vm1, %v1069_v30, %v1073_v59  ;;  %3232 = vmatmul.mubr.msk.bf16.vlgmr.msra.gmra.mrb[4].mxu0 %vm106_vm0, %v3231_v19 }
 0x213   :  { %v1082_v6 = vsel %vm214_vm1, %v3569_v0, %v3568_v1  ;;  %v1111_v9 = vmul.f32 %v4189_v58, %v1087_v16  ;;  %3233 = vmatmul.mubr.msk.bf16.vlgmr.msra.gmra.mrb[4].mxu1 %vm106_vm0, %v3231_v19  ;;  %v1084_v4 = vsel %vm214_vm1, %v3564_v54, %v3569_v0  ;;  %v1088_v13 = vsel %vm214_vm1, %v3568_v1, %v3563_v61 }
 0x214   :  { %v1077_v38 = vpop.permute.xlu1 %1076  ;;  %1155 = vmatprep.mubr.bf16.mxu0 %v4807_v3  ;;  %1196 = vmatprep.mubr.bf16.mxu1 %v4807_v3  ;;  %v1109_v35 = vmul.f32 %v4197_v5, %v1082_v6  ;;  %v1108_v61 = vmul.f32 %v4203_v41, %v1084_v4  ;;  %v1106_v19 = vmul.f32 %v4210_v11, %v1088_v13 }
 0x215   :  { %v1085_v44 = vsel %vm214_vm1, %v1073_v59, %v1077_v38  ;;  %v1081_v48 = vpop.permute.xlu0 %1080  ;;  %v1117_v50 = vpack.c.bf16 %v1111_v9, %v1107_v39  ;;  %v1212_v1 = vpack.c.bf16 %v3894_v10, %v3728_v26  ;;  %v3234_v26 = vld [vmem:[%s4803_s5 + $0xc] sm:$0xf] }
 0x216   :  { %v1112_v12 = vmul.f32 %v4203_v41, %v1085_v44  ;;  %v1083_v52 = vsel %vm214_vm1, %v1077_v38, %v1081_v48  ;;  %v1089_v54 = vsel %vm214_vm1, %v1081_v48, %v1069_v30  ;;  %v4236_v30 = vrot.slane %v3945_v17, %v3751_v34 }
 0x217   :  { %v1110_v32 = vmul.f32 %v4210_v11, %v1089_v54  ;;  %v1113_v57 = vmul.f32 %v4197_v5, %v1083_v52  ;;  %1123 = vmatprep.subr.bf16.mxu0 %v1117_v50  ;;  %v1214_v44 = vpack.c.bf16 %v3902_v15, %v3732_v28  ;;  %v1213_v54 = vpack.c.bf16 %v3900_v14, %v3730_v27 }
 0x218   :  { %v3577_v0 = vpop.permute.xlu1 %3576  ;;  %v1118_v59 = vpack.c.bf16 %v1112_v12, %v1108_v61  ;;  %v4249_v12 = vrot.slane %v3988_v31, %v3751_v34 }
 0x219   :  { %v1116_v16 = vpack.c.bf16 %v1110_v32, %v1106_v19  ;;  %v3572_v6 = vpop.permute.xlu0 %3571  ;;  %v1119_v9 = vpack.c.bf16 %v1113_v57, %v1109_v35  ;;  %v3579_v39 = vunpack.i.h.bf16 %v3577_v0  ;;  %v3578_v4 = vunpack.i.l.bf16 %v3577_v0 }
 0x21a   :  { %v3574_v13 = vunpack.i.h.bf16 %v3572_v6  ;;  %v3573_v38 = vunpack.i.l.bf16 %v3572_v6  ;;  %v1211_v35 = vpack.c.bf16 %v3892_v7, %v3726_v25  ;;  %v4263_v25 = vrot.slane %v3962_v29, %v3751_v34 }
 0x21b   :  { %1124 = vmatpush1.bf16.msra.mxu0 %v1116_v16  ;;  %1164 = vmatprep.subr.bf16.mxu1 %v1119_v9  ;;  %v1327_v15 = vsel %vm1320_vm5, %v3579_v39, %v3578_v4  ;;  %v4270_v32 = vrot.slane %v3983_v24, %v3751_v34 }
 0x21c   :  { %v1323_v10 = vsel %vm1320_vm5, %v3573_v38, %v3574_v13  ;;  %v1311_v48 = vpop.permute.xlu1 %1310  ;;  %1165 = vmatpush1.bf16.msra.mxu1 %v1118_v59  ;;  %1218 = vmatprep.subr.bf16.mxu0 %v1212_v1  ;;  %v1321_v19 = vsel %vm1320_vm5, %v3574_v13, %v3579_v39  ;;  %v1348_v57 = vmul.f32 %v4249_v12, %v1327_v15 }
 0x21d   :  { %v1315_v50 = vpop.permute.xlu0 %1314  ;;  %1259 = vmatprep.subr.bf16.mxu1 %v1214_v44  ;;  %v1346_v28 = vmul.f32 %v4236_v30, %v1323_v10  ;;  %v1325_v0 = vsel %vm1320_vm5, %v3578_v4, %v3573_v38  ;;  %v1347_v6 = vmul.f32 %v4263_v25, %v1321_v19  ;;  %v4287_v39 = vrot.slane %v3945_v17, %v3759_v36 }
 0x21e   :  { %v1324_v52 = vsel %vm1320_vm5, %v1311_v48, %v1315_v50  ;;  %3235 = vmatmul.mubr.msk.bf16.vlgmr.msra.gmra.mrb[4].mxu0 %vm106_vm0, %v3234_v26  ;;  %v1345_v13 = vmul.f32 %v4270_v32, %v1325_v0 }
 0x21f   :  { %v1350_v61 = vmul.f32 %v4236_v30, %v1324_v52  ;;  %3236 = vmatmul.mubr.msk.bf16.vlgmr.msra.gmra.mrb[4].mxu1 %vm106_vm0, %v3234_v26  ;;  %1219 = vmatpush1.bf16.msra.mxu0 %v1211_v35 }
 0x220   :  { %v1319_v7 = vpop.permute.xlu1 %1318  ;;  %1260 = vmatpush1.bf16.msra.mxu1 %v1213_v54  ;;  %1250 = vmatprep.mubr.bf16.mxu0 %v4807_v3 }
 0x221   :  { %v1307_v27 = vpop.permute.xlu0 %1306  ;;  %v1356_v14 = vpack.c.bf16 %v1350_v61, %v1346_v28  ;;  %1291 = vmatprep.mubr.bf16.mxu1 %v4807_v3  ;;  %v1322_v1 = vsel %vm1320_vm5, %v1315_v50, %v1319_v7  ;;  %v3237_v28 = vld [vmem:[%s4803_s5 + $0x10] sm:$0xf] }
 0x222   :  { %v1326_v59 = vsel %vm1320_vm5, %v1307_v27, %v1311_v48  ;;  %v1328_v16 = vsel %vm1320_vm5, %v1319_v7, %v1307_v27  ;;  %v1351_v4 = vmul.f32 %v4263_v25, %v1322_v1  ;;  %v4299_v7 = vrot.slane %v3988_v31, %v3759_v36 }
 0x223   :  { %v1352_v34 = vmul.f32 %v4249_v12, %v1328_v16  ;;  %1362 = vmatprep.subr.bf16.mxu0 %v1356_v14  ;;  %v1349_v38 = vmul.f32 %v4270_v32, %v1326_v59  ;;  %v4311_v1 = vrot.slane %v3962_v29, %v3759_v36 }
 0x224   :  { %v3587_v9 = vpop.permute.xlu1 %3586  ;;  %v1357_v27 = vpack.c.bf16 %v1351_v4, %v1347_v6 }
 0x225   :  { %v3582_v44 = vpop.permute.xlu0 %3581  ;;  %v1358_v26 = vpack.c.bf16 %v1352_v34, %v1348_v57  ;;  %v3589_v10 = vunpack.i.h.bf16 %v3587_v9  ;;  %v3588_v48 = vunpack.i.l.bf16 %v3587_v9  ;;  %v1355_v54 = vpack.c.bf16 %v1349_v38, %v1345_v13 }
 0x226   :  { %v3584_v50 = vunpack.i.h.bf16 %v3582_v44  ;;  %v3583_v35 = vunpack.i.l.bf16 %v3582_v44  ;;  %v4318_v34 = vrot.slane %v3983_v24, %v3759_v36 }
 0x227   :  { %1403 = vmatprep.subr.bf16.mxu1 %v1358_v26  ;;  %v1471_v14 = vsel %vm1464_vm6, %v3589_v10, %v3588_v48 }
 0x228   :  { %v1467_v15 = vsel %vm1464_vm6, %v3583_v35, %v3584_v50  ;;  %v1455_v52 = vpop.permute.xlu1 %1454  ;;  %v1465_v16 = vsel %vm1464_vm6, %v3584_v50, %v3589_v10  ;;  %v1492_v4 = vmul.f32 %v4299_v7, %v1471_v14  ;;  %v1469_v13 = vsel %vm1464_vm6, %v3588_v48, %v3583_v35 }
 0x229   :  { %v1459_v61 = vpop.permute.xlu0 %1458  ;;  %v1490_v19 = vmul.f32 %v4287_v39, %v1467_v15  ;;  %v1491_v10 = vmul.f32 %v4311_v1, %v1465_v16  ;;  %v4335_v48 = vrot.slane %v3945_v17, %v3799_v60 }
 0x22a   :  { %v1468_v57 = vsel %vm1464_vm6, %v1455_v52, %v1459_v61  ;;  %3238 = vmatmul.mubr.msk.bf16.vlgmr.msra.gmra.mrb[4].mxu0 %vm106_vm0, %v3237_v28 }
 0x22b   :  { %v1494_v0 = vmul.f32 %v4287_v39, %v1468_v57  ;;  %1363 = vmatpush1.bf16.msra.mxu0 %v1355_v54  ;;  %3239 = vmatmul.mubr.msk.bf16.vlgmr.msra.gmra.mrb[4].mxu1 %vm106_vm0, %v3237_v28  ;;  %v1489_v28 = vmul.f32 %v4318_v34, %v1469_v13  ;;  %v3240_v57 = vld [vmem:[%s4803_s5 + $0x14] sm:$0xf] }
 0x22c   :  { %1404 = vmatpush1.bf16.msra.mxu1 %v1357_v27  ;;  %v1463_v59 = vpop.permute.xlu1 %1462  ;;  %1394 = vmatprep.mubr.bf16.mxu0 %v4807_v3 }
 0x22d   :  { %v1451_v6 = vpop.permute.xlu0 %1450  ;;  %v1500_v9 = vpack.c.bf16 %v1494_v0, %v1490_v19  ;;  %1435 = vmatprep.mubr.bf16.mxu1 %v4807_v3  ;;  %v1466_v38 = vsel %vm1464_vm6, %v1459_v61, %v1463_v59 }
 0x22e   :  { %v1470_v44 = vsel %vm1464_vm6, %v1451_v6, %v1455_v52  ;;  %v1472_v26 = vsel %vm1464_vm6, %v1463_v59, %v1451_v6  ;;  %v1495_v35 = vmul.f32 %v4311_v1, %v1466_v38 }
 0x22f   :  { %v1496_v36 = vmul.f32 %v4299_v7, %v1472_v26  ;;  %1506 = vmatprep.subr.bf16.mxu0 %v1500_v9  ;;  %v1493_v15 = vmul.f32 %v4318_v34, %v1470_v44  ;;  %v4347_v9 = vrot.slane %v3988_v31, %v3799_v60 }
 0x230   :  { %v3597_v50 = vpop.permute.xlu1 %3596  ;;  %v1501_v13 = vpack.c.bf16 %v1495_v35, %v1491_v10  ;;  %v4366_v35 = vrot.slane %v3983_v24, %v3799_v60 }
 0x231   :  { %v3592_v52 = vpop.permute.xlu0 %3591  ;;  %v1502_v54 = vpack.c.bf16 %v1496_v36, %v1492_v4  ;;  %v3599_v61 = vunpack.i.h.bf16 %v3597_v50  ;;  %v3598_v19 = vunpack.i.l.bf16 %v3597_v50  ;;  %v1499_v16 = vpack.c.bf16 %v1493_v15, %v1489_v28 }
 0x232   :  { %v3594_v27 = vunpack.i.h.bf16 %v3592_v52  ;;  %v3593_v14 = vunpack.i.l.bf16 %v3592_v52  ;;  %v4359_v36 = vrot.slane %v3962_v29, %v3799_v60 }
 0x233   :  { %1547 = vmatprep.subr.bf16.mxu1 %v1502_v54  ;;  %v1615_v38 = vsel %vm1608_vm7, %v3599_v61, %v3598_v19 }
 0x234   :  { %v1611_v0 = vsel %vm1608_vm7, %v3593_v14, %v3594_v27  ;;  %v1599_v59 = vpop.permute.xlu1 %1598  ;;  %4814 = vst [vmem:[#allocation2_spill] sm:$0xff] %v4359_v36  ;;  %v1609_v10 = vsel %vm1608_vm7, %v3594_v27, %v3599_v61  ;;  %v1636_v52 = vmul.f32 %v4347_v9, %v1615_v38  ;;  %v1613_v54 = vsel %vm1608_vm7, %v3598_v19, %v3593_v14 }
 0x235   :  { %v1603_v6 = vpop.permute.xlu0 %1602  ;;  %v1634_v4 = vmul.f32 %v4335_v48, %v1611_v0  ;;  %v1635_v27 = vmul.f32 %v4359_v36, %v1609_v10  ;;  %v4383_v19 = vrot.slane %v3945_v17, %v4050_v49  ;;  %v3243_v10 = vld [vmem:[%s4803_s5 + $0x18] sm:$0xf] }
 0x236   :  { %v1612_v44 = vsel %vm1608_vm7, %v1599_v59, %v1603_v6  ;;  %3241 = vmatmul.mubr.msk.bf16.vlgmr.msra.gmra.mrb[4].mxu0 %vm106_vm0, %v3240_v57 }
 0x237   :  { %v1638_v26 = vmul.f32 %v4335_v48, %v1612_v44  ;;  %1507 = vmatpush1.bf16.msra.mxu0 %v1499_v16  ;;  %3242 = vmatmul.mubr.msk.bf16.vlgmr.msra.gmra.mrb[4].mxu1 %vm106_vm0, %v3240_v57  ;;  %4815 = vst [vmem:[#allocation3_spill] sm:$0xff] %v4383_v19 }
 0x238   :  { %1548 = vmatpush1.bf16.msra.mxu1 %v1501_v13  ;;  %v1607_v50 = vpop.permute.xlu1 %1606  ;;  %1538 = vmatprep.mubr.bf16.mxu0 %v4807_v3 }
 0x239   :  { %v1595_v28 = vpop.permute.xlu0 %1594  ;;  %v1644_v15 = vpack.c.bf16 %v1638_v26, %v1634_v4  ;;  %1579 = vmatprep.mubr.bf16.mxu1 %v4807_v3  ;;  %v1610_v57 = vsel %vm1608_vm7, %v1603_v6, %v1607_v50  ;;  %v1633_v6 = vmul.f32 %v4366_v35, %v1613_v54  ;;  %v4395_v54 = vrot.slane %v3988_v31, %v4050_v49 }
 0x23a   :  { %v1614_v0 = vsel %vm1608_vm7, %v1595_v28, %v1599_v59  ;;  %v1616_v61 = vsel %vm1608_vm7, %v1607_v50, %v1595_v28  ;;  %v1639_v14 = vmul.f32 %v4359_v36, %v1610_v57  ;;  %v4408_v31 = vrot.slane %v3983_v24, %v4050_v49 }
 0x23b   :  { %v1640_v60 = vmul.f32 %v4347_v9, %v1616_v61  ;;  %1650 = vmatprep.subr.bf16.mxu0 %v1644_v15  ;;  %v1637_v59 = vmul.f32 %v4366_v35, %v1614_v0  ;;  %4816 = vst [vmem:[#allocation4_spill] sm:$0xff] %v4395_v54 }
 0x23c   :  { %v3607_v16 = vpop.permute.xlu1 %3606  ;;  %v1645_v0 = vpack.c.bf16 %v1639_v14, %v1635_v27  ;;  %4817 = vst [vmem:[#allocation5_spill] sm:$0xff] %v4408_v31 }
 0x23d   :  { %v3602_v4 = vpop.permute.xlu0 %3601  ;;  %v1646_v13 = vpack.c.bf16 %v1640_v60, %v1636_v52  ;;  %v3609_v38 = vunpack.i.h.bf16 %v3607_v16  ;;  %v3608_v44 = vunpack.i.l.bf16 %v3607_v16  ;;  %v1643_v15 = vpack.c.bf16 %v1637_v59, %v1633_v6 }
 0x23e   :  { %v3604_v26 = vunpack.i.h.bf16 %v3602_v4  ;;  %v3603_v50 = vunpack.i.l.bf16 %v3602_v4 }
 0x23f   :  { %1691 = vmatprep.subr.bf16.mxu1 %v1646_v13  ;;  %v1759_v61 = vsel %vm1752_vm8, %v3609_v38, %v3608_v44  ;;  %v4416_v13 = vrot.slane %v3962_v29, %v4050_v49 }
 0x240   :  { %v1755_v17 = vsel %vm1752_vm8, %v3603_v50, %v3604_v26  ;;  %v1743_v28 = vpop.permute.xlu1 %1742  ;;  %v1780_v59 = vmul.f32 %v4395_v54, %v1759_v61  ;;  %v1757_v4 = vsel %vm1752_vm8, %v3608_v44, %v3603_v50 }
 0x241   :  { %v1747_v57 = vpop.permute.xlu0 %1746  ;;  %v1778_v52 = vmul.f32 %v4383_v19, %v1755_v17  ;;  %4818 = vst [vmem:[#allocation6_spill] sm:$0xff] %v4416_v13  ;;  %v1753_v17 = vsel %vm1752_vm8, %v3604_v26, %v3609_v38  ;;  %v1777_v44 = vmul.f32 %v4408_v31, %v1757_v4  ;;  %v3246_v38 = vld [vmem:[%s4803_s5 + $0x1c] sm:$0xf] }
 0x242   :  { %v1756_v60 = vsel %vm1752_vm8, %v1743_v28, %v1747_v57  ;;  %3244 = vmatmul.mubr.msk.bf16.vlgmr.msra.gmra.mrb[4].mxu0 %vm106_vm0, %v3243_v10  ;;  %v1779_v50 = vmul.f32 %v4416_v13, %v1753_v17 }
 0x243   :  { %v1782_v16 = vmul.f32 %v4383_v19, %v1756_v60  ;;  %1651 = vmatpush1.bf16.msra.mxu0 %v1643_v15  ;;  %3245 = vmatmul.mubr.msk.bf16.vlgmr.msra.gmra.mrb[4].mxu1 %vm106_vm0, %v3243_v10 }
 0x244   :  { %1692 = vmatpush1.bf16.msra.mxu1 %v1645_v0  ;;  %v1751_v6 = vpop.permute.xlu1 %1750  ;;  %1682 = vmatprep.mubr.bf16.mxu0 %v4807_v3 }
 0x245   :  { %v1739_v27 = vpop.permute.xlu0 %1738  ;;  %v1788_v14 = vpack.c.bf16 %v1782_v16, %v1778_v52  ;;  %1723 = vmatprep.mubr.bf16.mxu1 %v4807_v3  ;;  %v1754_v15 = vsel %vm1752_vm8, %v1747_v57, %v1751_v6  ;;  %v3249_v57 = vld [vmem:[%s4803_s5 + $0x20] sm:$0xf] }
 0x246   :  { %v1758_v10 = vsel %vm1752_vm8, %v1739_v27, %v1743_v28  ;;  %v1760_v24 = vsel %vm1752_vm8, %v1751_v6, %v1739_v27  ;;  %v1783_v28 = vmul.f32 %v4416_v13, %v1754_v15 }
 0x247   :  { %v1784_v52 = vmul.f32 %v4395_v54, %v1760_v24  ;;  %1794 = vmatprep.subr.bf16.mxu0 %v1788_v14  ;;  %v1781_v29 = vmul.f32 %v4408_v31, %v1758_v10 }
 0x248   :  { %v1789_v0 = vpack.c.bf16 %v1783_v28, %v1779_v50 }
 0x249   :  { %v1790_v49 = vpack.c.bf16 %v1784_v52, %v1780_v59  ;;  %v1787_v26 = vpack.c.bf16 %v1781_v29, %v1777_v44 }
 0x24b   :  { %1835 = vmatprep.subr.bf16.mxu1 %v1790_v49 }
 0x24e   :  { %3247 = vmatmul.mubr.msk.bf16.vlgmr.msra.gmra.mrb[4].mxu0 %vm106_vm0, %v3246_v38 }
 0x24f   :  { %1795 = vmatpush1.bf16.msra.mxu0 %v1787_v26  ;;  %3248 = vmatmul.mubr.msk.bf16.vlgmr.msra.gmra.mrb[4].mxu1 %vm106_vm0, %v3246_v38 }
 0x250   :  { %1836 = vmatpush1.bf16.msra.mxu1 %v1789_v0  ;;  %1826 = vmatprep.mubr.bf16.mxu0 %v4807_v3 }
 0x251   :  { %1867 = vmatprep.mubr.bf16.mxu1 %v4807_v3 }
 0x256   :  { %v634_v61 = vpop.permute.xlu0 %633 }
 0x25a   :  { %3250 = vmatmul.mubr.msk.bf16.vlgmr.msra.gmra.mrb[4].mxu0 %vm106_vm0, %v3249_v57 }
 0x25b   :  { %3251 = vmatmul.mubr.msk.bf16.vlgmr.msra.gmra.mrb[4].mxu1 %vm106_vm0, %v3249_v57  ;;  %2085 = vmatprep.mubr.bf16.mxu0 %v4807_v3 }
 0x25c   :  { %2126 = vmatprep.mubr.bf16.mxu1 %v4807_v3 }
 0x32d   :  { %v1828_v60 = vpop.f32.mrb[4].mxu0 }
 0x32e   :  { %v3300_v16 = vadd.f32 %v1828_v60, %v634_v61  ;;  %v1830_v6 = vpop.f32.mrb[5].mxu0  ;;  %v1869_v27 = vpop.f32.mrb[4].mxu1 }
 0x32f   :  { %v3301_v14 = vadd.f32 %v1830_v6, %v634_v61  ;;  %v3302_v59 = vadd.f32 %v1869_v27, %v634_v61  ;;  %v1832_v4 = vpop.f32.mrb[6].mxu0  ;;  %v1871_v10 = vpop.f32.mrb[5].mxu1 }
 0x330   :  { %v1896_v24 = vmul.f32 %v3300_v16, %v3992_v37  ;;  %v1930_v17 = vmul.f32 %v3300_v16, %v4000_v42  ;;  %v1833_v15 = vpop.f32.mrb[7].mxu0  ;;  %v1873_v52 = vpop.f32.mrb[6].mxu1  ;;  %v3303_v49 = vadd.f32 %v1871_v10, %v634_v61 }
 0x331   :  { %v1897_v44 = vmul.f32 %v3301_v14, %v3949_v18  ;;  %v1931_v29 = vmul.f32 %v3301_v14, %v3953_v20  ;;  %v1874_v50 = vpop.f32.mrb[7].mxu1  ;;  %v1898_v28 = vmul.f32 %v3302_v59, %v3966_v21  ;;  %v1932_v38 = vmul.f32 %v3302_v59, %v3970_v22 }
 0x332   :  { %v1933_v57 = vmul.f32 %v3303_v49, %v4004_v43  ;;  %v1899_v6 = vmul.f32 %v3303_v49, %v3996_v40 }
 0x333   :  { %v1934_v26 = vadd.f32 %v1931_v29, %v1930_v17  ;;  %v1900_v0 = vadd.f32 %v1897_v44, %v1896_v24 }
 0x335   :  { %v1935_v60 = vadd.f32 %v1934_v26, %v1932_v38  ;;  %v1901_v27 = vadd.f32 %v1900_v0, %v1898_v28 }
 0x337   :  { %v1936_v4 = vadd.f32 %v1935_v60, %v1933_v57  ;;  %v1902_v15 = vadd.f32 %v1901_v27, %v1899_v6 }
 0x339   :  { %1937 = vadd.xlane.f32.xlu0 %v1936_v4  ;;  %1903 = vadd.xlane.f32.xlu1 %v1902_v15 }
 0x3c6   :  { %v1938_v52 = vpop.xlane.xlu0 %1937  ;;  %v1904_v3 = vpop.xlane.xlu1 %1903 }
 0x3c7   :  { %v1939_v61 = vmul.f32 0.00390625, %v1938_v52  ;;  %v1905_v10 = vmul.f32 0.00390625, %v1904_v3 }
 0x3c9   :  { %v1940_v50 = vmul.f32 %v1939_v61, %v4000_v42  ;;  %v1941_v13 = vmul.f32 %v1939_v61, %v3953_v20  ;;  %v1942_v24 = vmul.f32 %v1939_v61, %v3970_v22  ;;  %v1943_v17 = vmul.f32 %v1939_v61, %v4004_v43 }
 0x3ca   :  { %v1906_v44 = vmul.f32 %v1905_v10, %v3992_v37  ;;  %v1907_v29 = vmul.f32 %v1905_v10, %v3949_v18  ;;  %v1908_v28 = vmul.f32 %v1905_v10, %v3966_v21  ;;  %v1909_v38 = vmul.f32 %v1905_v10, %v3996_v40 }
 0x3cc   :  { %v1944_v26 = vadd.f32 %v1940_v50, %v1906_v44  ;;  %v1945_v0 = vadd.f32 %v1941_v13, %v1907_v29  ;;  %v1946_v57 = vadd.f32 %v1942_v24, %v1908_v28  ;;  %v1947_v3 = vadd.f32 %v1943_v17, %v1909_v38 }
 0x3ce   :  { %v1948_v60 = vsub.f32 %v3300_v16, %v1944_v26  ;;  %v1949_v6 = vsub.f32 %v3301_v14, %v1945_v0  ;;  %v1950_v27 = vsub.f32 %v3302_v59, %v1946_v57  ;;  %v1951_v4 = vsub.f32 %v3303_v49, %v1947_v3 }
 0x3d0   :  { %v1952_v15 = vmul.f32 %v1948_v60, %v1948_v60  ;;  %v1953_v52 = vmul.f32 %v1949_v6, %v1949_v6  ;;  %v1954_v31 = vmul.f32 %v1950_v27, %v1950_v27  ;;  %v1955_v61 = vmul.f32 %v1951_v4, %v1951_v4 }
 0x3d2   :  { %v1976_v54 = vmul.f32 %v1952_v15, %v4000_v42  ;;  %v1977_v19 = vmul.f32 %v1953_v52, %v3953_v20  ;;  %v1956_v36 = vmul.f32 %v1952_v15, %v3992_v37  ;;  %v1957_v10 = vmul.f32 %v1953_v52, %v3949_v18 }
 0x3d3   :  { %v1978_v13 = vmul.f32 %v1954_v31, %v3970_v22  ;;  %v1958_v16 = vmul.f32 %v1954_v31, %v3966_v21  ;;  %v1979_v59 = vmul.f32 %v1955_v61, %v4004_v43  ;;  %v1959_v24 = vmul.f32 %v1955_v61, %v3996_v40 }
 0x3d4   :  { %v1980_v50 = vadd.f32 %v1977_v19, %v1976_v54  ;;  %v1960_v14 = vadd.f32 %v1957_v10, %v1956_v36 }
 0x3d6   :  { %v1981_v49 = vadd.f32 %v1980_v50, %v1978_v13  ;;  %v1961_v17 = vadd.f32 %v1960_v14, %v1958_v16 }
 0x3d8   :  { %v1982_v44 = vadd.f32 %v1981_v49, %v1979_v59  ;;  %v1962_v29 = vadd.f32 %v1961_v17, %v1959_v24 }
 0x3da   :  { %1983 = vadd.xlane.f32.xlu1 %v1982_v44  ;;  %1963 = vadd.xlane.f32.xlu0 %v1962_v29 }
 0x467   :  { %v1984_v28 = vpop.xlane.xlu1 %1983  ;;  %v1964_v26 = vpop.xlane.xlu0 %1963 }
 0x468   :  { %v1985_v38 = vmul.f32 0.00390625, %v1984_v28  ;;  %v1965_v0 = vmul.f32 0.00390625, %v1964_v26 }
 0x46a   :  { %v1986_v57 = vadd.f32 1e-05, %v1985_v38  ;;  %v1966_v3 = vadd.f32 1e-05, %v1965_v0 }
 0x46c   :  { %3615 = vrsqrt.f32 %v1986_v57 }
 0x46d   :  { %3617 = vrsqrt.f32 %v1966_v3 }
 0x476   :  { %v3616_v19 = vpop.eup %3615 }
 0x477   :  { %v3618_v36 = vpop.eup %3617  ;;  %v1988_v54 = vmul.f32 %v3616_v19, %v4000_v42  ;;  %v1989_v31 = vmul.f32 %v3616_v19, %v3953_v20  ;;  %v1990_v15 = vmul.f32 %v3616_v19, %v3970_v22  ;;  %v1991_v52 = vmul.f32 %v3616_v19, %v4004_v43 }
 0x478   :  { %v1968_v61 = vmul.f32 %v3618_v36, %v3992_v37  ;;  %v1969_v10 = vmul.f32 %v3618_v36, %v3949_v18  ;;  %v1970_v13 = vmul.f32 %v3618_v36, %v3966_v21  ;;  %v1971_v50 = vmul.f32 %v3618_v36, %v3996_v40 }
 0x47a   :  { %v1993_v16 = vadd.f32 %v1989_v31, %v1969_v10  ;;  %v1992_v14 = vadd.f32 %v1988_v54, %v1968_v61  ;;  %v1995_v59 = vadd.f32 %v1991_v52, %v1971_v50  ;;  %v1994_v49 = vadd.f32 %v1990_v15, %v1970_v13 }
 0x47c   :  { %v1997_v24 = vmul.f32 %v1993_v16, %v1949_v6  ;;  %v1996_v17 = vmul.f32 %v1992_v14, %v1948_v60  ;;  %v1999_v44 = vmul.f32 %v1995_v59, %v1951_v4  ;;  %v1998_v29 = vmul.f32 %v1994_v49, %v1950_v27  ;;  %v2008_v60 = vld [vmem:[%s4804_s8] sm:$0xff] }
 0x47e   :  { %v2001_v28 = vmul.f32 0.01, %v1997_v24  ;;  %v2000_v38 = vmul.f32 0.01, %v1996_v17  ;;  %v2003_v57 = vmul.f32 0.01, %v1999_v44 }
 0x47f   :  { %v2002_v3 = vmul.f32 0.01, %v1998_v29 }
 0x480   :  { %v4477_v26 = vmax.f32 %v1997_v24, %v2001_v28  ;;  %v4479_v0 = vmax.f32 %v1996_v17, %v2000_v38  ;;  %v4485_v19 = vmax.f32 %v1999_v44, %v2003_v57 }
 0x481   :  { %v4487_v6 = vmax.f32 %v1998_v29, %v2002_v3 }
 0x482   :  { %2017 = vrot.lane.b32.xlu1 %v4477_v26, %s3626_s20  ;;  %2015 = vrot.lane.b32.xlu0 %v4479_v0, %s3626_s20 }
 0x486   :  { %2021 = vrot.lane.b32.xlu1 %v4485_v19, %s3626_s20  ;;  %2019 = vrot.lane.b32.xlu0 %v4487_v6, %s3626_s20 }
 0x48a   :  { %2139 = vrot.lane.b32.xlu1 %v4479_v0, %s3625_s19  ;;  %2141 = vrot.lane.b32.xlu0 %v4477_v26, %s3625_s19 }
 0x48e   :  { %2145 = vrot.lane.b32.xlu1 %v4485_v19, %s3625_s19  ;;  %2143 = vrot.lane.b32.xlu0 %v4487_v6, %s3625_s19 }
 0x492   :  { %2262 = vrot.lane.b32.xlu1 %v4479_v0, %s3627_s2  ;;  %2264 = vrot.lane.b32.xlu0 %v4477_v26, %s3627_s2 }
 0x496   :  { %2268 = vrot.lane.b32.xlu1 %v4485_v19, %s3627_s2  ;;  %2266 = vrot.lane.b32.xlu0 %v4487_v6, %s3627_s2 }
 0x49a   :  { %2385 = vrot.lane.b32.xlu1 %v4479_v0, %s3624_s17  ;;  %2387 = vrot.lane.b32.xlu0 %v4477_v26, %s3624_s17 }
 0x49e   :  { %2391 = vrot.lane.b32.xlu1 %v4485_v19, %s3624_s17  ;;  %2389 = vrot.lane.b32.xlu0 %v4487_v6, %s3624_s17 }
 0x4a2   :  { %2615 = vrot.lane.b32.xlu1 %v4479_v0, %s3628_s3  ;;  %2617 = vrot.lane.b32.xlu0 %v4477_v26, %s3628_s3 }
 0x4a6   :  { %2619 = vrot.lane.b32.xlu1 %v4487_v6, %s3628_s3  ;;  %2621 = vrot.lane.b32.xlu0 %v4485_v19, %s3628_s3 }
 0x4aa   :  { %2738 = vrot.lane.b32.xlu1 %v4479_v0, %s3629_s4  ;;  %2740 = vrot.lane.b32.xlu0 %v4477_v26, %s3629_s4 }
 0x4ae   :  { %2742 = vrot.lane.b32.xlu1 %v4487_v6, %s3629_s4  ;;  %2744 = vrot.lane.b32.xlu0 %v4485_v19, %s3629_s4 }
 0x4b2   :  { %2861 = vrot.lane.b32.xlu1 %v4479_v0, %s3630_s27  ;;  %2863 = vrot.lane.b32.xlu0 %v4477_v26, %s3630_s27 }
 0x4b6   :  { %2865 = vrot.lane.b32.xlu1 %v4487_v6, %s3630_s27  ;;  %2867 = vrot.lane.b32.xlu0 %v4485_v19, %s3630_s27 }
 0x4ba   :  { %2984 = vrot.lane.b32.xlu1 %v4479_v0, %s3631_s28  ;;  %2986 = vrot.lane.b32.xlu0 %v4477_v26, %s3631_s28 }
 0x4be   :  { %2988 = vrot.lane.b32.xlu1 %v4487_v6, %s3631_s28  ;;  %2990 = vrot.lane.b32.xlu0 %v4485_v19, %s3631_s28 }
 0x4c2   :  { %2011 = vperm.xlu1 %3610, %v2008_v60  }
 0x4f4   :  { %v2018_v27 = vpop.permute.xlu1 %2017  ;;  %v2016_v4 = vpop.permute.xlu0 %2015 }
 0x4f5   :  { %v2025_v36 = vsel %vm502_vm3, %v2016_v4, %v2018_v27 }
 0x4f6   :  { %v2028_v54 = vmul.f32 %v2025_v36, %v4054_v53 }
 0x4f8   :  { %v2033_v31 = vpack.c.bf16 %v2028_v54, %v2028_v54  ;;  %v2022_v15 = vpop.permute.xlu1 %2021  ;;  %v2020_v52 = vpop.permute.xlu0 %2019  ;;  %v4819_v54 = vmov 0  }
 0x4f9   :  { %v2026_v61 = vsel %vm502_vm3, %v2022_v15, %v2016_v4  ;;  %v2023_v10 = vsel %vm502_vm3, %v2020_v52, %v2022_v15  ;;  %v2024_v13 = vsel %vm502_vm3, %v2018_v27, %v2020_v52 }
 0x4fa   :  { %v2027_v50 = vmul.f32 %v2026_v61, %v4063_v62  ;;  %v2029_v16 = vmul.f32 %v2024_v13, %v4076_v2  ;;  %v2030_v14 = vmul.f32 %v2023_v10, %v4067_v63  ;;  %3252 = vmatprep.subr.msk.bf16.mxu0 %vm2040_vm9, %v2033_v31  ;;  %v2031_v63 = vld [vmem:[%s4805_s7] sm:$0xf] }
 0x4fc   :  { %v2032_v53 = vpack.c.bf16 %v2027_v50, %v2027_v50  ;;  %v2034_v59 = vpack.c.bf16 %v2029_v16, %v2029_v16  ;;  %v2035_v49 = vpack.c.bf16 %v2030_v14, %v2030_v14  ;;  %v2140_v24 = vpop.permute.xlu1 %2139  ;;  %v2142_v17 = vpop.permute.xlu0 %2141 }
 0x4fd   :  { %v2149_v44 = vsel %vm358_vm2, %v2140_v24, %v2142_v17 }
 0x4fe   :  { %v2152_v29 = vmul.f32 %v2149_v44, %v4094_v55  ;;  %3254 = vmatprep.subr.msk.bf16.mxu1 %vm2040_vm9, %v2035_v49  ;;  %v2042_v62 = vsel %vm2040_vm9, %v2032_v53, 0  ;;  %v2048_v2 = vsel %vm2040_vm9, %v2034_v59, 0  ;;  %v3256_v44 = vld [vmem:[%s4805_s7 + $0x4] sm:$0xf] }
 0x4ff   :  { %2054 = vmatpush1.bf16.msra.mxu0 %v2042_v62  ;;  %2095 = vmatpush1.bf16.msra.mxu1 %v2048_v2 }
 0x500   :  { %v2158_v28 = vpack.c.bf16 %v2152_v29, %v2152_v29  ;;  %v2146_v38 = vpop.permute.xlu1 %2145  ;;  %v2144_v57 = vpop.permute.xlu0 %2143 }
 0x501   :  { %v2150_v3 = vsel %vm358_vm2, %v2146_v38, %v2140_v24  ;;  %v2147_v55 = vsel %vm358_vm2, %v2144_v57, %v2146_v38  ;;  %v2148_v60 = vsel %vm358_vm2, %v2142_v17, %v2144_v57 }
 0x502   :  { %v2151_v27 = vmul.f32 %v2150_v3, %v4114_v8  ;;  %v2153_v4 = vmul.f32 %v2148_v60, %v4121_v46  ;;  %v2154_v36 = vmul.f32 %v2147_v55, %v4103_v45  ;;  %3253 = vmatmul.mubr.msk.bf16.vlgmr.msra.gmra.mrb[8].mxu0 %vm2036_vm10, %v2031_v63  ;;  %3255 = vmatmul.mubr.msk.bf16.vlgmr.msra.gmra.mrb[8].mxu1 %vm2036_vm10, %v2031_v63 }
 0x503   :  { %3257 = vmatprep.subr.msk.bf16.mxu0 %vm2040_vm9, %v2158_v28  ;;  %2208 = vmatprep.mubr.bf16.mxu0 %v4819_v54 }
 0x504   :  { %v2157_v31 = vpack.c.bf16 %v2151_v27, %v2151_v27  ;;  %v2159_v15 = vpack.c.bf16 %v2153_v4, %v2153_v4  ;;  %v2160_v52 = vpack.c.bf16 %v2154_v36, %v2154_v36  ;;  %v2263_v61 = vpop.permute.xlu1 %2262  ;;  %v2265_v10 = vpop.permute.xlu0 %2264  ;;  %2249 = vmatprep.mubr.bf16.mxu1 %v4819_v54 }
 0x505   :  { %v2272_v8 = vsel %vm938_vm4, %v2263_v61, %v2265_v10 }
 0x506   :  { %v2275_v45 = vmul.f32 %v2272_v8, %v4142_v47  ;;  %3259 = vmatprep.subr.msk.bf16.mxu1 %vm2040_vm9, %v2160_v52  ;;  %v2165_v46 = vsel %vm2040_vm9, %v2157_v31, 0  ;;  %v2171_v13 = vsel %vm2040_vm9, %v2159_v15, 0 }
 0x507   :  { %2177 = vmatpush1.bf16.msra.mxu0 %v2165_v46  ;;  %2218 = vmatpush1.bf16.msra.mxu1 %v2171_v13  ;;  %v2513_v46 = vpack.c.bf16 %v4485_v19, %v4485_v19 }
 0x508   :  { %v2281_v50 = vpack.c.bf16 %v2275_v45, %v2275_v45  ;;  %v2269_v16 = vpop.permute.xlu1 %2268  ;;  %v2267_v14 = vpop.permute.xlu0 %2266  ;;  %v3261_v45 = vld [vmem:[%s4805_s7 + $0x8] sm:$0xf] }
 0x509   :  { %v2273_v53 = vsel %vm938_vm4, %v2269_v16, %v2263_v61  ;;  %v2270_v59 = vsel %vm938_vm4, %v2267_v14, %v2269_v16  ;;  %v2271_v47 = vsel %vm938_vm4, %v2265_v10, %v2267_v14 }
 0x50a   :  { %v2274_v49 = vmul.f32 %v2273_v53, %v4162_v51  ;;  %v2276_v24 = vmul.f32 %v2271_v47, %v4169_v56  ;;  %v2277_v17 = vmul.f32 %v2270_v59, %v4151_v23  ;;  %3262 = vmatprep.subr.msk.bf16.mxu0 %vm2040_vm9, %v2281_v50  ;;  %v2510_v47 = vpack.c.bf16 %v4479_v0, %v4479_v0 }
 0x50c   :  { %v2280_v29 = vpack.c.bf16 %v2274_v49, %v2274_v49  ;;  %v2282_v62 = vpack.c.bf16 %v2276_v24, %v2276_v24  ;;  %v2283_v2 = vpack.c.bf16 %v2277_v17, %v2277_v17  ;;  %v2386_v63 = vpop.permute.xlu1 %2385  ;;  %v2388_v28 = vpop.permute.xlu0 %2387  ;;  %v2512_v49 = vpack.c.bf16 %v4487_v6, %v4487_v6  ;;  %v3266_v24 = vld [vmem:[%s4805_s7 + $0xc] sm:$0xf] }
 0x50d   :  { %v2395_v38 = vsel %vm214_vm1, %v2386_v63, %v2388_v28 }
 0x50e   :  { %v2398_v51 = vmul.f32 %v2395_v38, %v4189_v58  ;;  %3258 = vmatmul.mubr.msk.bf16.vlgmr.msra.gmra.mrb[8].mxu0 %vm2036_vm10, %v3256_v44  ;;  %3260 = vmatmul.mubr.msk.bf16.vlgmr.msra.gmra.mrb[8].mxu1 %vm2036_vm10, %v3256_v44  ;;  %v2288_v23 = vsel %vm2040_vm9, %v2280_v29, 0  ;;  %v2294_v56 = vsel %vm2040_vm9, %v2282_v62, 0 }
 0x50f   :  { %3264 = vmatprep.subr.msk.bf16.mxu1 %vm2040_vm9, %v2283_v2  ;;  %2300 = vmatpush1.bf16.msra.mxu0 %v2288_v23 }
 0x510   :  { %v2404_v57 = vpack.c.bf16 %v2398_v51, %v2398_v51  ;;  %2341 = vmatpush1.bf16.msra.mxu1 %v2294_v56  ;;  %v2392_v3 = vpop.permute.xlu1 %2391  ;;  %v2390_v55 = vpop.permute.xlu0 %2389  ;;  %2331 = vmatprep.mubr.bf16.mxu0 %v4819_v54 }
 0x511   :  { %v2396_v58 = vsel %vm214_vm1, %v2392_v3, %v2386_v63  ;;  %v2393_v60 = vsel %vm214_vm1, %v2390_v55, %v2392_v3  ;;  %v2394_v27 = vsel %vm214_vm1, %v2388_v28, %v2390_v55  ;;  %2372 = vmatprep.mubr.bf16.mxu1 %v4819_v54 }
 0x512   :  { %v2397_v4 = vmul.f32 %v2396_v58, %v4210_v11  ;;  %v2399_v36 = vmul.f32 %v2394_v27, %v4203_v41  ;;  %v2400_v31 = vmul.f32 %v2393_v60, %v4197_v5  ;;  %3267 = vmatprep.subr.msk.bf16.mxu0 %vm2040_vm9, %v2404_v57  ;;  %v2511_v11 = vpack.c.bf16 %v4477_v26, %v4477_v26 }
 0x514   :  { %v2406_v15 = vpack.c.bf16 %v2400_v31, %v2400_v31  ;;  %v2403_v52 = vpack.c.bf16 %v2397_v4, %v2397_v4  ;;  %v2405_v61 = vpack.c.bf16 %v2399_v36, %v2399_v36  ;;  %v2616_v10 = vpop.permute.xlu1 %2615  ;;  %v2618_v8 = vpop.permute.xlu0 %2617 }
 0x515   :  { %v2625_v0 = vsel %vm1320_vm5, %v2616_v10, %v2618_v8 }
 0x516   :  { %3269 = vmatprep.subr.msk.bf16.mxu1 %vm2040_vm9, %v2406_v15  ;;  %v2411_v41 = vsel %vm2040_vm9, %v2403_v52, 0  ;;  %v2417_v5 = vsel %vm2040_vm9, %v2405_v61, 0  ;;  %v2627_v2 = vmul.f32 %v2625_v0, %v4270_v32  ;;  %v3271_v32 = vld [vmem:[%s4805_s7 + $0x10] sm:$0xf]  ;;  %v3281_v0 = vld [vmem:[%s4805_s7 + $0x18] sm:$0xf] }
 0x518   :  { %v2620_v13 = vpop.permute.xlu1 %2619  ;;  %v2622_v50 = vpop.permute.xlu0 %2621  ;;  %v2633_v51 = vpack.c.bf16 %v2627_v2, %v2627_v2 }
 0x519   :  { %v2624_v16 = vsel %vm1320_vm5, %v2618_v8, %v2620_v13  ;;  %v2626_v26 = vsel %vm1320_vm5, %v2622_v50, %v2616_v10  ;;  %v2623_v6 = vsel %vm1320_vm5, %v2620_v13, %v2622_v50 }
 0x51a   :  { %3263 = vmatmul.mubr.msk.bf16.vlgmr.msra.gmra.mrb[8].mxu0 %vm2036_vm10, %v3261_v45  ;;  %3265 = vmatmul.mubr.msk.bf16.vlgmr.msra.gmra.mrb[8].mxu1 %vm2036_vm10, %v3261_v45  ;;  %v2628_v19 = vmul.f32 %v2624_v16, %v4236_v30  ;;  %v2630_v14 = vmul.f32 %v2626_v26, %v4249_v12  ;;  %v2518_v30 = vsel %vm2040_vm9, %v2510_v47, 0  ;;  %v2524_v12 = vsel %vm2040_vm9, %v2512_v49, 0 }
 0x51b   :  { %2423 = vmatpush1.bf16.msra.mxu0 %v2411_v41  ;;  %2464 = vmatpush1.bf16.msra.mxu1 %v2417_v5  ;;  %v2629_v63 = vmul.f32 %v2623_v6, %v4263_v25  ;;  %v2641_v60 = vsel %vm2040_vm9, %v2633_v51, 0  ;;  %v4824_v51 = vld [vmem:[#allocation6_spill] sm:$0xff] }
 0x51c   :  { %3272 = vmatprep.subr.msk.bf16.mxu0 %vm2040_vm9, %v2511_v11  ;;  %3274 = vmatprep.subr.msk.bf16.mxu1 %vm2040_vm9, %v2513_v46  ;;  %v2739_v53 = vpop.permute.xlu1 %2738  ;;  %v2741_v59 = vpop.permute.xlu0 %2740  ;;  %v2634_v17 = vpack.c.bf16 %v2628_v19, %v2628_v19  ;;  %v2636_v44 = vpack.c.bf16 %v2630_v14, %v2630_v14  ;;  %v4820_v14 = vld [vmem:[#allocation2_spill] sm:$0xff] }
 0x51d   :  { %2454 = vmatprep.mubr.bf16.mxu0 %v4819_v54  ;;  %2495 = vmatprep.mubr.bf16.mxu1 %v4819_v54  ;;  %v2635_v23 = vpack.c.bf16 %v2629_v63, %v2629_v63 }
 0x51f   :  { %v2647_v27 = vsel %vm2040_vm9, %v2635_v23, 0 }
 0x520   :  { %v2743_v29 = vpop.permute.xlu1 %2742  ;;  %v2745_v62 = vpop.permute.xlu0 %2744 }
 0x521   :  { %v2747_v28 = vsel %vm1464_vm6, %v2741_v59, %v2743_v29  ;;  %v2749_v38 = vsel %vm1464_vm6, %v2745_v62, %v2739_v53 }
 0x522   :  { %v2751_v56 = vmul.f32 %v2747_v28, %v4287_v39  ;;  %v2753_v57 = vmul.f32 %v2749_v38, %v4299_v7  ;;  %v2748_v39 = vsel %vm1464_vm6, %v2739_v53, %v2741_v59  ;;  %v2746_v7 = vsel %vm1464_vm6, %v2743_v29, %v2745_v62  ;;  %v4823_v28 = vld [vmem:[#allocation5_spill] sm:$0xff] }
 0x523   :  { %v2750_v31 = vmul.f32 %v2748_v39, %v4318_v34  ;;  %v2752_v15 = vmul.f32 %v2746_v7, %v4311_v1  ;;  %v3276_v34 = vld [vmem:[%s4805_s7 + $0x14] sm:$0xf] }
 0x524   :  { %v2862_v3 = vpop.permute.xlu1 %2861  ;;  %v2864_v55 = vpop.permute.xlu0 %2863  ;;  %v2757_v58 = vpack.c.bf16 %v2751_v56, %v2751_v56  ;;  %v2759_v25 = vpack.c.bf16 %v2753_v57, %v2753_v57 }
 0x525   :  { %v2756_v10 = vpack.c.bf16 %v2750_v31, %v2750_v31  ;;  %v2758_v8 = vpack.c.bf16 %v2752_v15, %v2752_v15 }
 0x526   :  { %3268 = vmatmul.mubr.msk.bf16.vlgmr.msra.gmra.mrb[8].mxu0 %vm2036_vm10, %v3266_v24  ;;  %3270 = vmatmul.mubr.msk.bf16.vlgmr.msra.gmra.mrb[8].mxu1 %vm2036_vm10, %v3266_v24 }
 0x527   :  { %2530 = vmatpush1.bf16.msra.mxu0 %v2518_v30  ;;  %2571 = vmatpush1.bf16.msra.mxu1 %v2524_v12  ;;  %v2764_v13 = vsel %vm2040_vm9, %v2756_v10, 0  ;;  %v2770_v50 = vsel %vm2040_vm9, %v2758_v8, 0  ;;  %v4822_v30 = vld [vmem:[#allocation4_spill] sm:$0xff] }
 0x528   :  { %3277 = vmatprep.subr.msk.bf16.mxu0 %vm2040_vm9, %v2634_v17  ;;  %3279 = vmatprep.subr.msk.bf16.mxu1 %vm2040_vm9, %v2636_v44  ;;  %v2866_v4 = vpop.permute.xlu1 %2865  ;;  %v2868_v36 = vpop.permute.xlu0 %2867  ;;  %v4821_v17 = vld [vmem:[#allocation3_spill] sm:$0xff] }
 0x529   :  { %2561 = vmatprep.mubr.bf16.mxu0 %v4819_v54  ;;  %2602 = vmatprep.mubr.bf16.mxu1 %v4819_v54  ;;  %v2870_v52 = vsel %vm1608_vm7, %v2864_v55, %v2866_v4  ;;  %v2872_v61 = vsel %vm1608_vm7, %v2868_v36, %v2862_v3 }
 0x52a   :  { %v2874_v45 = vmul.f32 %v2870_v52, %v4335_v48  ;;  %v2876_v41 = vmul.f32 %v2872_v61, %v4347_v9  ;;  %v2871_v48 = vsel %vm1608_vm7, %v2862_v3, %v2864_v55  ;;  %v2869_v9 = vsel %vm1608_vm7, %v2866_v4, %v2868_v36 }
 0x52b   :  { %v2873_v19 = vmul.f32 %v2871_v48, %v4366_v35  ;;  %v2875_v53 = vmul.f32 %v2869_v9, %v4820_v14 }
 0x52c   :  { %v2985_v5 = vpop.permute.xlu1 %2984  ;;  %v2987_v11 = vpop.permute.xlu0 %2986  ;;  %v2880_v46 = vpack.c.bf16 %v2874_v45, %v2874_v45  ;;  %v2882_v1 = vpack.c.bf16 %v2876_v41, %v2876_v41 }
 0x52d   :  { %v2879_v49 = vpack.c.bf16 %v2873_v19, %v2873_v19  ;;  %v2881_v24 = vpack.c.bf16 %v2875_v53, %v2875_v53  ;;  %v2994_v2 = vsel %vm1752_vm8, %v2985_v5, %v2987_v11 }
 0x52e   :  { %v2996_v38 = vmul.f32 %v2994_v2, %v4823_v28 }
 0x52f   :  { %v2887_v29 = vsel %vm2040_vm9, %v2879_v49, 0  ;;  %v2893_v62 = vsel %vm2040_vm9, %v2881_v24, 0 }
 0x530   :  { %v2989_v16 = vpop.permute.xlu1 %2988  ;;  %v2991_v26 = vpop.permute.xlu0 %2990  ;;  %v3002_v56 = vpack.c.bf16 %v2996_v38, %v2996_v38 }
 0x531   :  { %v2993_v59 = vsel %vm1752_vm8, %v2987_v11, %v2989_v16  ;;  %v2995_v47 = vsel %vm1752_vm8, %v2991_v26, %v2985_v5  ;;  %v2992_v63 = vsel %vm1752_vm8, %v2989_v16, %v2991_v26 }
 0x532   :  { %3273 = vmatmul.mubr.msk.bf16.vlgmr.msra.gmra.mrb[8].mxu0 %vm2036_vm10, %v3271_v32  ;;  %3275 = vmatmul.mubr.msk.bf16.vlgmr.msra.gmra.mrb[8].mxu1 %vm2036_vm10, %v3271_v32  ;;  %v2997_v44 = vmul.f32 %v2993_v59, %v4821_v17  ;;  %v2999_v12 = vmul.f32 %v2995_v47, %v4822_v30  ;;  %v2998_v23 = vmul.f32 %v2992_v63, %v4824_v51  ;;  %v3010_v3 = vsel %vm2040_vm9, %v3002_v56, 0  ;;  %v3291_v32 = vld [vmem:[%s4805_s7 + $0x20] sm:$0xf] }
 0x533   :  { %2653 = vmatpush1.bf16.msra.mxu0 %v2641_v60  ;;  %2694 = vmatpush1.bf16.msra.mxu1 %v2647_v27 }
 0x534   :  { %3282 = vmatprep.subr.msk.bf16.mxu0 %vm2040_vm9, %v2757_v58  ;;  %3284 = vmatprep.subr.msk.bf16.mxu1 %vm2040_vm9, %v2759_v25  ;;  %v3003_v6 = vpack.c.bf16 %v2997_v44, %v2997_v44  ;;  %v3005_v35 = vpack.c.bf16 %v2999_v12, %v2999_v12  ;;  %v3004_v57 = vpack.c.bf16 %v2998_v23, %v2998_v23 }
 0x535   :  { %2684 = vmatprep.mubr.bf16.mxu0 %v4819_v54  ;;  %2725 = vmatprep.mubr.bf16.mxu1 %v4819_v54 }
 0x536   :  { %v3016_v55 = vsel %vm2040_vm9, %v3004_v57, 0 }
 0x53e   :  { %3278 = vmatmul.mubr.msk.bf16.vlgmr.msra.gmra.mrb[8].mxu0 %vm2036_vm10, %v3276_v34  ;;  %3280 = vmatmul.mubr.msk.bf16.vlgmr.msra.gmra.mrb[8].mxu1 %vm2036_vm10, %v3276_v34 }
 0x53f   :  { %2776 = vmatpush1.bf16.msra.mxu0 %v2764_v13  ;;  %2817 = vmatpush1.bf16.msra.mxu1 %v2770_v50 }
 0x540   :  { %3287 = vmatprep.subr.msk.bf16.mxu0 %vm2040_vm9, %v2880_v46  ;;  %3289 = vmatprep.subr.msk.bf16.mxu1 %vm2040_vm9, %v2882_v1 }
 0x541   :  { %2807 = vmatprep.mubr.bf16.mxu0 %v4819_v54  ;;  %2848 = vmatprep.mubr.bf16.mxu1 %v4819_v54  ;;  %v2012_v58 = vpop.permute.xlu1 %2011 }
 0x54a   :  { %3283 = vmatmul.mubr.msk.bf16.vlgmr.msra.gmra.mrb[8].mxu0 %vm2036_vm10, %v3281_v0  ;;  %3285 = vmatmul.mubr.msk.bf16.vlgmr.msra.gmra.mrb[8].mxu1 %vm2036_vm10, %v3281_v0 }
 0x54b   :  { %2899 = vmatpush1.bf16.msra.mxu0 %v2887_v29  ;;  %2940 = vmatpush1.bf16.msra.mxu1 %v2893_v62 }
 0x54c   :  { %3292 = vmatprep.subr.msk.bf16.mxu0 %vm2040_vm9, %v3003_v6  ;;  %3294 = vmatprep.subr.msk.bf16.mxu1 %vm2040_vm9, %v3005_v35 }
 0x54d   :  { %2930 = vmatprep.mubr.bf16.mxu0 %v4819_v54  ;;  %2971 = vmatprep.mubr.bf16.mxu1 %v4819_v54 }
 0x556   :  { %3288 = vmatmul.mubr.msk.bf16.vlgmr.msra.gmra.mrb[8].mxu0 %vm2036_vm10, %v3286_v33  ;;  %3290 = vmatmul.mubr.msk.bf16.vlgmr.msra.gmra.mrb[8].mxu1 %vm2036_vm10, %v3286_v33 }
 0x557   :  { %3022 = vmatpush1.bf16.msra.mxu0 %v3010_v3  ;;  %3063 = vmatpush1.bf16.msra.mxu1 %v3016_v55 }
 0x558   :  { %3053 = vmatprep.mubr.bf16.mxu0 %v4819_v54  ;;  %3094 = vmatprep.mubr.bf16.mxu1 %v4819_v54 }
 0x562   :  { %3293 = vmatmul.mubr.msk.bf16.vlgmr.msra.gmra.mrb[8].mxu0 %vm2036_vm10, %v3291_v32  ;;  %3295 = vmatmul.mubr.msk.bf16.vlgmr.msra.gmra.mrb[8].mxu1 %vm2036_vm10, %v3291_v32 }
 0x635   :  { %v3055_v25 = vpop.f32.mrb[8].mxu0  ;;  %v3096_v60 = vpop.f32.mrb[8].mxu1 }
 0x636   :  { %v3304_v27 = vadd.f32 %v3055_v25, %v2012_v58  ;;  %v3057_v39 = vpop.f32.mrb[9].mxu0  ;;  %v3098_v7 = vpop.f32.mrb[9].mxu1  ;;  %v3306_v4 = vadd.f32 %v3096_v60, %v2012_v58 }
 0x637   :  { %v3305_v36 = vadd.f32 %v3057_v39, %v2012_v58  ;;  %v3059_v31 = vpop.f32.mrb[10].mxu0  ;;  %v3100_v15 = vpop.f32.mrb[10].mxu1  ;;  %v3307_v41 = vadd.f32 %v3098_v7, %v2012_v58 }
 0x638   :  { %v3107_v54 = vmul.f32 %v3304_v27, %v3992_v37  ;;  %v3125_v52 = vmul.f32 %v3304_v27, %v4000_v42  ;;  %v3060_v61 = vpop.f32.mrb[11].mxu0  ;;  %v3101_v10 = vpop.f32.mrb[11].mxu1  ;;  %v3109_v5 = vmul.f32 %v3306_v4, %v3966_v21  ;;  %v3127_v11 = vmul.f32 %v3306_v4, %v3970_v22 }
 0x639   :  { %v3108_v8 = vmul.f32 %v3305_v36, %v3949_v18  ;;  %v3126_v45 = vmul.f32 %v3305_v36, %v3953_v20  ;;  %v3110_v1 = vmul.f32 %v3307_v41, %v3996_v40  ;;  %v3128_v13 = vmul.f32 %v3307_v41, %v4004_v43 }
 0x63b   :  { %v3111_v34 = vadd.f32 %v3108_v8, %v3107_v54  ;;  %v3129_v46 = vadd.f32 %v3126_v45, %v3125_v52 }
 0x63d   :  { %v3130_v50 = vadd.f32 %v3129_v46, %v3127_v11  ;;  %v3112_v48 = vadd.f32 %v3111_v34, %v3109_v5 }
 0x63f   :  { %v3131_v9 = vadd.f32 %v3130_v50, %v3128_v13  ;;  %v3113_v16 = vadd.f32 %v3112_v48, %v3110_v1 }
 0x641   :  { %3132 = vadd.xlane.f32.xlu1 %v3131_v9  ;;  %3114 = vadd.xlane.f32.xlu0 %v3113_v16 }
 0x6ce   :  { %v3133_v26 = vpop.xlane.xlu1 %3132  ;;  %v3115_v19 = vpop.xlane.xlu0 %3114 }
 0x6cf   :  { %v3134_v14 = vmul.f32 0.00390625, %v3133_v26  ;;  %v3116_v53 = vmul.f32 0.00390625, %v3115_v19 }
 0x6d1   :  { %v3135_v59 = vmul.f32 %v3134_v14, %v4000_v42  ;;  %v3136_v47 = vmul.f32 %v3134_v14, %v3953_v20  ;;  %v3137_v49 = vmul.f32 %v3134_v14, %v3970_v22  ;;  %v3138_v24 = vmul.f32 %v3134_v14, %v4004_v43 }
 0x6d2   :  { %v3117_v17 = vmul.f32 %v3116_v53, %v3992_v37  ;;  %v3118_v44 = vmul.f32 %v3116_v53, %v3949_v18  ;;  %v3119_v30 = vmul.f32 %v3116_v53, %v3966_v21  ;;  %v3120_v12 = vmul.f32 %v3116_v53, %v3996_v40 }
 0x6d4   :  { %v3139_v0 = vadd.f32 %v3135_v59, %v3117_v17  ;;  %v3140_v6 = vadd.f32 %v3136_v47, %v3118_v44  ;;  %v3141_v35 = vadd.f32 %v3137_v49, %v3119_v30  ;;  %v3142_v29 = vadd.f32 %v3138_v24, %v3120_v12 }
 0x6d6   :  { %v3143_v62 = vsub.f32 %v3304_v27, %v3139_v0  ;;  %v3144_v2 = vsub.f32 %v3305_v36, %v3140_v6  ;;  %v3145_v63 = vsub.f32 %v3306_v4, %v3141_v35  ;;  %v3146_v28 = vsub.f32 %v3307_v41, %v3142_v29 }
 0x6d8   :  { %v3147_v38 = vmul.f32 %v3143_v62, %v3143_v62  ;;  %v3148_v51 = vmul.f32 %v3144_v2, %v3144_v2  ;;  %v3149_v23 = vmul.f32 %v3145_v63, %v3145_v63  ;;  %v3150_v56 = vmul.f32 %v3146_v28, %v3146_v28 }
 0x6da   :  { %v3151_v57 = vmul.f32 %v3147_v38, %v3992_v37  ;;  %v3152_v33 = vmul.f32 %v3148_v51, %v3949_v18  ;;  %v3171_v3 = vmul.f32 %v3147_v38, %v4000_v42  ;;  %v3172_v55 = vmul.f32 %v3148_v51, %v3953_v20 }
 0x6db   :  { %v3153_v32 = vmul.f32 %v3149_v23, %v3966_v21  ;;  %v3154_v60 = vmul.f32 %v3150_v56, %v3996_v40  ;;  %v3173_v39 = vmul.f32 %v3149_v23, %v3970_v22  ;;  %v3174_v36 = vmul.f32 %v3150_v56, %v4004_v43 }
 0x6dc   :  { %v3155_v58 = vadd.f32 %v3152_v33, %v3151_v57  ;;  %v3175_v25 = vadd.f32 %v3172_v55, %v3171_v3 }
 0x6de   :  { %v3156_v27 = vadd.f32 %v3155_v58, %v3153_v32  ;;  %v3176_v4 = vadd.f32 %v3175_v25, %v3173_v39 }
 0x6e0   :  { %v3157_v7 = vadd.f32 %v3156_v27, %v3154_v60  ;;  %v3177_v31 = vadd.f32 %v3176_v4, %v3174_v36 }
 0x6e2   :  { %3158 = vadd.xlane.f32.xlu0 %v3157_v7 }
 0x6e6   :  { %3178 = vadd.xlane.f32.xlu0 %v3177_v31 }
 0x76f   :  { %v3159_v15 = vpop.xlane.xlu0 %3158 }
 0x770   :  { %v3160_v54 = vmul.f32 0.00390625, %v3159_v15 }
 0x772   :  { %v3161_v52 = vadd.f32 1e-05, %v3160_v54 }
 0x773   :  { %v3179_v61 = vpop.xlane.xlu0 %3178 }
 0x774   :  { %v3180_v10 = vmul.f32 0.00390625, %v3179_v61  ;;  %3619 = vrsqrt.f32 %v3161_v52 }
 0x776   :  { %v3181_v8 = vadd.f32 1e-05, %v3180_v10 }
 0x778   :  { %3621 = vrsqrt.f32 %v3181_v8 }
 0x77e   :  { %v3620_v45 = vpop.eup %3619 }
 0x77f   :  { %v3163_v5 = vmul.f32 %v3620_v45, %v3992_v37  ;;  %v3164_v11 = vmul.f32 %v3620_v45, %v3949_v18  ;;  %v3165_v34 = vmul.f32 %v3620_v45, %v3966_v21  ;;  %v3166_v46 = vmul.f32 %v3620_v45, %v3996_v40 }
 0x782   :  { %v3622_v41 = vpop.eup %3621 }
 0x783   :  { %v3183_v1 = vmul.f32 %v3622_v41, %v4000_v42  ;;  %v3184_v13 = vmul.f32 %v3622_v41, %v3953_v20  ;;  %v3185_v50 = vmul.f32 %v3622_v41, %v3970_v22  ;;  %v3186_v48 = vmul.f32 %v3622_v41, %v4004_v43 }
 0x785   :  { %v3187_v9 = vadd.f32 %v3183_v1, %v3163_v5  ;;  %v3188_v16 = vadd.f32 %v3184_v13, %v3164_v11  ;;  %v3189_v26 = vadd.f32 %v3185_v50, %v3165_v34  ;;  %v3190_v19 = vadd.f32 %v3186_v48, %v3166_v46 }
 0x787   :  { %v3191_v14 = vmul.f32 %v3187_v9, %v3143_v62  ;;  %v3192_v37 = vmul.f32 %v3188_v16, %v3144_v2  ;;  %v3193_v53 = vmul.f32 %v3189_v26, %v3145_v63  ;;  %v3194_v18 = vmul.f32 %v3190_v19, %v3146_v28 }
 0x789   :  { %v3195_v59 = vmul.f32 0.01, %v3191_v14  ;;  %v3196_v21 = vmul.f32 0.01, %v3192_v37  ;;  %v3197_v47 = vmul.f32 0.01, %v3193_v53 }
 0x78a   :  { %v3198_v40 = vmul.f32 0.01, %v3194_v18 }
 0x78b   :  { %v3199_v49 = vmax.f32 %v3191_v14, %v3195_v59  ;;  %v3200_v42 = vmax.f32 %v3192_v37, %v3196_v21  ;;  %v3201_v24 = vmax.f32 %v3193_v53, %v3197_v47 }
 0x78c   :  { %v3202_v20 = vmax.f32 %v3194_v18, %v3198_v40 }
 0x78d   :  { %3203 = vst [vmem:[%s4806_s9] sm:$0xff] %v3199_v49  ;;  %3204 = vst [vmem:[%s4806_s9 + $0x8] sm:$0xff] %v3200_v42 }
 0x78e   :  { %3205 = vst [vmem:[%s4806_s9 + $0x10] sm:$0xff] %v3201_v24  ;;  %3206 = vst [vmem:[%s4806_s9 + $0x18] sm:$0xff] %v3202_v20 }

</bundles_post_ra>
